<compile_context>
chip_gen: v7x
topology: tpu7x:2x2x1
jax: 0.10.0
libtpu: 0.0.40
codegen_flags: <defaults>
</compile_context>

<pallas_src>
import functools

import jax
import jax.numpy as jnp
from jax.experimental import pallas as pl
from jax.experimental.pallas import tpu as pltpu

LANE = 128
SUBLANE = 8


def _round_up(v, m):
    return (v + m - 1) // m * m


def _pad2(a, shape, value=0.0):
    pads = [(0, t - s) for s, t in zip(a.shape, shape)]
    return jnp.pad(a, pads, constant_values=value)


# ---------------------------------------------------------------------------
# Fused kernel: all GINConv layers + global_mean_pool + MLP head + log_softmax
# ---------------------------------------------------------------------------
def gin0_fused_kernel(adj_ref, x_ref,
                      w11_ref, b11_ref, w12_ref, b12_ref,
                      g1_ref, be1_ref, mu1_ref, va1_ref,
                      w1s_ref, b1s_ref, w2s_ref, b2s_ref,
                      gs_ref, bs_ref, ms_ref, vs_ref,
                      pool_ref, invcnt_ref,
                      hw1_ref, hb1_ref, hw2_ref, hb2_ref,
                      out_ref, h_ref,
                      *, num_layers, num_classes, num_nodes):
    f32 = jnp.float32
    bf16 = jnp.bfloat16

    def mlp_bn(agg, w1, b1, w2, b2, gamma, beta, mean, var):
        # MLP: Linear -> ReLU -> Linear -> ReLU   (bf16 MXU, f32 accumulate)
        z = jnp.dot(agg.astype(bf16), w1, preferred_element_type=f32) + b1
        z = jnp.maximum(z, 0.0)
        z = jnp.dot(z.astype(bf16), w2, preferred_element_type=f32) + b2
        z = jnp.maximum(z, 0.0)
        # BatchNorm1d (eval mode, running stats), eps = 1e-5.  Padded channels
        # use gamma=beta=mean=0, var=1 so padded lanes stay exactly 0.
        inv = jax.lax.rsqrt(var + 1e-5)
        h = (z - mean) * inv * gamma + beta
        # Zero padded node rows so they never feed back through the `+ h` self
        # term (pool/adjacency columns for padded nodes are already zero).
        rows = jax.lax.broadcasted_iota(jnp.int32, h.shape, 0)
        return jnp.where(rows < num_nodes, h, 0.0)

    # ---- layer 1: input width f_p, output width h_p ----------------------
    x_bf = x_ref[...]
    agg = (jnp.dot(adj_ref[...], x_bf, preferred_element_type=f32)
           + x_bf.astype(f32))                       # (A @ x) + x
    h_ref[...] = mlp_bn(agg, w11_ref[...], b11_ref[...],
                        w12_ref[...], b12_ref[...],
                        g1_ref[...], be1_ref[...], mu1_ref[...], va1_ref[...])

    # ---- layers 2..L: hidden width h_p throughout -------------------------
    # Static unroll; fine for small L.  Switch to lax.fori_loop with dynamic
    # ref indexing (w1s_ref[l], ...) if num_layers grows beyond ~6.
    for l in range(num_layers - 1):
        h_f32 = h_ref[...]
        agg = (jnp.dot(adj_ref[...], h_f32.astype(bf16),
                       preferred_element_type=f32) + h_f32)
        h_ref[...] = mlp_bn(agg, w1s_ref[l], b1s_ref[l],
                            w2s_ref[l], b2s_ref[l],
                            gs_ref[l], bs_ref[l], ms_ref[l], vs_ref[l])

    # ---- head: global_mean_pool -> relu(lin1) -> (dropout=id) -> lin2 -----
    h_bf = h_ref[...].astype(bf16)
    pooled = jnp.dot(pool_ref[...], h_bf,
                     preferred_element_type=f32) * invcnt_ref[...]
    z = jnp.dot(pooled.astype(bf16), hw1_ref[...],
                preferred_element_type=f32) + hb1_ref[...]
    z = jnp.maximum(z, 0.0)
    logits = jnp.dot(z.astype(bf16), hw2_ref[...],
                     preferred_element_type=f32) + hb2_ref[...]
    # Mask padded class lanes so they contribute exp(.) = 0 to the softmax.
    cls = jax.lax.broadcasted_iota(jnp.int32, logits.shape, 1)
    logits = jnp.where(cls < num_classes, logits, -1e30)
    m = jnp.max(logits, axis=-1, keepdims=True)
    zc = logits - m
    lse = jnp.log(jnp.sum(jnp.exp(zc), axis=-1, keepdims=True))
    out_ref[...] = zc - lse


# ---------------------------------------------------------------------------
# Wrapper: padding, dense-operator glue, single pallas_call
# ---------------------------------------------------------------------------
@functools.partial(jax.jit, static_argnames=("num_graphs",))
def gin0_forward(x, edge_index, batch, params, num_graphs):
    n, f = x.shape
    hidden = params["convs"][0]["w2"].shape[1]
    num_classes = params["head"]["w2"].shape[1]
    num_layers = len(params["convs"])

    n_p = _round_up(max(n, SUBLANE), LANE)      # node axis (lanes of adj)
    f_p = _round_up(f, LANE)                    # input feature lanes (layer 1)
    h_p = _round_up(hidden, LANE)               # hidden lanes (layers 1..L, head)
    c_p = _round_up(num_classes, LANE)
    g_p = _round_up(num_graphs, SUBLANE)

    # Glue: dense aggregation operator A[dst, src] = #edges src->dst.
    # Scatter-add in f32 (exact duplicate-edge counts) then cast to bf16
    # (small integer counts are exact in bf16).  No +I materialization.
    src, dst = edge_index[0], edge_index[1]
    adj = jnp.zeros((n_p, n_p), jnp.float32).at[dst, src].add(1.0)
    adj = adj.astype(jnp.bfloat16)

    x_p = _pad2(x, (n_p, f_p)).astype(jnp.bfloat16)

    # Glue: mean pool = exact {0,1} bf16 one-hot matmul + f32 1/count scale
    # applied inside the kernel (keeps pooling exact despite bf16 operands).
    batch_p = jnp.pad(batch, (0, n_p - n), constant_values=g_p)  # no match
    onehot = (batch_p[None, :] == jnp.arange(g_p)[:, None]).astype(jnp.float32)
    counts = jnp.maximum(onehot.sum(axis=1, keepdims=True), 1.0)
    inv_counts = (1.0 / counts).astype(jnp.float32)
    pool = onehot.astype(jnp.bfloat16)

    # Layer 1 parameters keep their own (f_p, h_p) shape; layers 2..L share
    # one (L-1, h_p, h_p) weight stack.
    convs = params["convs"]
    c1 = convs[0]
    w11 = _pad2(c1["w1"], (f_p, h_p)).astype(jnp.bfloat16)
    b11 = _pad2(c1["b1"], (1, h_p))
    w12 = _pad2(c1["w2"], (h_p, h_p)).astype(jnp.bfloat16)
    b12 = _pad2(c1["b2"], (1, h_p))
    g1 = _pad2(c1["gamma"], (1, h_p))
    be1 = _pad2(c1["beta"], (1, h_p))
    mu1 = _pad2(c1["mean"], (1, h_p))
    va1 = _pad2(c1["var"], (1, h_p), value=1.0)

    rest = convs[1:]
    if rest:
        w1s = jnp.stack([_pad2(p["w1"], (h_p, h_p)) for p in rest]).astype(jnp.bfloat16)
        w2s = jnp.stack([_pad2(p["w2"], (h_p, h_p)) for p in rest]).astype(jnp.bfloat16)
        b1s = jnp.stack([_pad2(p["b1"], (1, h_p)) for p in rest])
        b2s = jnp.stack([_pad2(p["b2"], (1, h_p)) for p in rest])
        gammas = jnp.stack([_pad2(p["gamma"], (1, h_p)) for p in rest])
        betas = jnp.stack([_pad2(p["beta"], (1, h_p)) for p in rest])
        means = jnp.stack([_pad2(p["mean"], (1, h_p)) for p in rest])
        vars_ = jnp.stack([_pad2(p["var"], (1, h_p), value=1.0) for p in rest])
    else:  # num_layers == 1: dummy (never read; loop trip-count is 0)
        w1s = jnp.zeros((1, h_p, h_p), jnp.bfloat16)
        w2s = jnp.zeros((1, h_p, h_p), jnp.bfloat16)
        b1s = jnp.zeros((1, 1, h_p), jnp.float32)
        b2s = jnp.zeros((1, 1, h_p), jnp.float32)
        gammas = jnp.zeros((1, 1, h_p), jnp.float32)
        betas = jnp.zeros((1, 1, h_p), jnp.float32)
        means = jnp.zeros((1, 1, h_p), jnp.float32)
        vars_ = jnp.ones((1, 1, h_p), jnp.float32)

    hp = params["head"]
    hw1 = _pad2(hp["w1"], (h_p, h_p)).astype(jnp.bfloat16)
    hb1 = _pad2(hp["b1"], (1, h_p))
    hw2 = _pad2(hp["w2"], (h_p, c_p)).astype(jnp.bfloat16)
    hb2 = _pad2(hp["b2"], (1, c_p))

    args = (adj, x_p,
            w11, b11, w12, b12, g1, be1, mu1, va1,
            w1s, b1s, w2s, b2s, gammas, betas, means, vars_,
            pool, inv_counts, hw1, hb1, hw2, hb2)

    # ---- VMEM budget: size the scoped limit from the actual resident
    # footprint, capped at ~85% of the queried per-core VMEM capacity
    # (v5e/v6e 128 MiB -> ~108 MiB, v7x 64 MiB -> ~54 MiB).
    def _vmem_alloc_bytes(a):
        s = list(a.shape)
        s[-1] = _round_up(s[-1], LANE)
        s[-2] = _round_up(s[-2], SUBLANE)
        size = 1
        for d in s:
            size *= d
        return size * a.dtype.itemsize

    footprint = (sum(_vmem_alloc_bytes(a) for a in args)
                 + g_p * c_p * 4            # output
                 + n_p * h_p * 4)           # h scratch
    try:
        phys_vmem = int(pltpu.get_tpu_info().vmem_capacity_bytes)
    except Exception:
        phys_vmem = 64 * 1024 * 1024        # conservative (v7x per-TC)
    vmem_cap = int(phys_vmem * 0.85)
    vmem_limit = int(min(max(2 * footprint + (8 << 20), 32 << 20), vmem_cap))

    # Advisory cost estimate so XLA schedules the scatter/one-hot glue around
    # the long-running custom call sensibly.
    flops = (2 * n_p * n_p * f_p + 2 * n_p * f_p * h_p + 2 * n_p * h_p * h_p
             + (num_layers - 1) * (2 * n_p * n_p * h_p + 4 * n_p * h_p * h_p)
             + 2 * g_p * n_p * h_p + 2 * g_p * h_p * h_p + 2 * g_p * h_p * c_p)
    cost = pl.CostEstimate(
        flops=int(flops),
        transcendentals=int(g_p * c_p + num_layers * h_p),
        bytes_accessed=int(sum(_vmem_alloc_bytes(a) for a in args)
                           + g_p * c_p * 4))

    kernel = functools.partial(gin0_fused_kernel,
                               num_layers=num_layers,
                               num_classes=num_classes,
                               num_nodes=n)

    out = pl.pallas_call(
        kernel,
        out_shape=jax.ShapeDtypeStruct((g_p, c_p), jnp.float32),
        in_specs=[pl.BlockSpec(memory_space=pltpu.MemorySpace.VMEM)
                  for _ in range(len(args))],
        out_specs=pl.BlockSpec(memory_space=pltpu.MemorySpace.VMEM),
        scratch_shapes=[pltpu.VMEM((n_p, h_p), jnp.float32)],
        compiler_params=pltpu.CompilerParams(vmem_limit_bytes=vmem_limit),
        cost_estimate=cost,
    )(*args)

    return out[:num_graphs, :num_classes]


# ---------------------------------------------------------------------------
# Pure-JAX reference (eval mode) for correctness checking
# ---------------------------------------------------------------------------
def gin0_reference(x, edge_index, batch, params, num_graphs):
    src, dst = edge_index[0], edge_index[1]
    n = x.shape[0]
    adj = jnp.zeros((n, n), jnp.float32).at[dst, src].add(1.0)
    h = x.astype(jnp.float32)
    for p in params["convs"]:
        agg = adj @ h + h
        z = jnp.maximum(agg @ p["w1"] + p["b1"], 0.0)
        z = jnp.maximum(z @ p["w2"] + p["b2"], 0.0)
        h = (z - p["mean"]) * jax.lax.rsqrt(p["var"] + 1e-5) * p["gamma"] + p["beta"]
    onehot = (batch[None, :] == jnp.arange(num_graphs)[:, None]).astype(jnp.float32)
    counts = jnp.maximum(onehot.sum(axis=1, keepdims=True), 1.0)
    pooled = (onehot @ h) / counts
    hp = params["head"]
    z = jnp.maximum(pooled @ hp["w1"] + hp["b1"], 0.0)
    logits = z @ hp["w2"] + hp["b2"]
    return jax.nn.log_softmax(logits, axis=-1)


# ---------------------------------------------------------------------------
# Deterministic parameter init (shapes follow the PyTorch module __init__)
# ---------------------------------------------------------------------------
def init_params(key, num_features, num_layers, hidden, num_classes):
    def linear(key, fan_in, fan_out):
        kw, kb = jax.random.split(key)
        bound = 1.0 / jnp.sqrt(fan_in)
        w = jax.random.uniform(kw, (fan_in, fan_out), jnp.float32, -bound, bound)
        b = jax.random.uniform(kb, (1, fan_out), jnp.float32, -bound, bound)
        return w, b

    def conv_params(key, in_dim, hid):
        k1, k2 = jax.random.split(key)
        w1, b1 = linear(k1, in_dim, hid)
        w2, b2 = linear(k2, hid, hid)
        return {
            "w1": w1, "b1": b1, "w2": w2, "b2": b2,
            "gamma": jnp.ones((1, hid), jnp.float32),
            "beta": jnp.zeros((1, hid), jnp.float32),
            "mean": jnp.zeros((1, hid), jnp.float32),
            "var": jnp.ones((1, hid), jnp.float32),
        }

    keys = jax.random.split(key, num_layers + 2)
    convs = [conv_params(keys[0], num_features, hidden)]
    for i in range(num_layers - 1):
        convs.append(conv_params(keys[1 + i], hidden, hidden))
    w1, b1 = linear(keys[num_layers], hidden, hidden)
    w2, b2 = linear(keys[num_layers + 1], hidden, num_classes)
    return {"convs": convs, "head": {"w1": w1, "b1": b1, "w2": w2, "b2": b2}}


# ---------------------------------------------------------------------------
if __name__ == "__main__":
    NUM_FEATURES, NUM_LAYERS, HIDDEN, NUM_CLASSES = 4, 3, 32, 4
    N_NODES, N_GRAPHS = 16, 2

    key = jax.random.PRNGKey(0)
    k_x, k_e, k_p = jax.random.split(key, 3)

    # Node features, random undirected-ish edge list, batch assignment.
    x = jax.random.normal(k_x, (N_NODES, NUM_FEATURES), jnp.float32)
    src = jax.random.randint(k_e, (24,), 0, N_NODES)
    dst = jnp.roll(src, 1)
    edge_index = jnp.stack([jnp.concatenate([src, dst]),
                            jnp.concatenate([dst, src])]).astype(jnp.int32)
    batch = jnp.concatenate([jnp.zeros(N_NODES // 2, jnp.int32),
                             jnp.ones(N_NODES - N_NODES // 2, jnp.int32)])

    params = init_params(k_p, NUM_FEATURES, NUM_LAYERS, HIDDEN, NUM_CLASSES)

    out = gin0_forward(x, edge_index, batch, params, num_graphs=N_GRAPHS)
    out = jax.block_until_ready(out)
    ref = gin0_reference(x, edge_index, batch, params, N_GRAPHS)

    assert out.shape == (N_GRAPHS, NUM_CLASSES)
    assert bool(jnp.all(jnp.isfinite(out)))
    # log_softmax rows must sum (in prob space) to ~1
    assert bool(jnp.allclose(jnp.exp(out).sum(-1), 1.0, atol=1e-4))
    # bf16 MXU operands vs f32 reference: loose tolerance
    assert bool(jnp.allclose(out, ref, atol=5e-2)), (out, ref)
    print("KERNEL_OK")
</pallas_src>

<mosaic_0001>
module attributes {stable_mosaic.version = 11 : i64} {
  func.func private @main(%arg0: i32) attributes {dimension_semantics = [#tpu.dimension_semantics<core_parallel>], iteration_bounds = array<i64: 2>, tpu.core_type = #tpu.core_type<sc_scalar_subcore>, window_params = []} {
    return
  }
}

module attributes {stable_mosaic.version = 11 : i64} {
  func.func private @main(%arg0: i32) attributes {dimension_semantics = [#tpu.dimension_semantics<core_parallel>], iteration_bounds = array<i64: 2>, tpu.core_type = #tpu.core_type<sc_scalar_subcore>, window_params = []} {
    return
  }
}

module attributes {stable_mosaic.version = 11 : i64} {
  func.func @gin0_fused_kernel(%arg0: memref<128x128xbf16, #tpu.memory_space<vmem>>, %arg1: memref<128x128xbf16, #tpu.memory_space<vmem>>, %arg2: memref<128x128xbf16, #tpu.memory_space<vmem>>, %arg3: memref<1x128xf32, #tpu.memory_space<vmem>>, %arg4: memref<128x128xbf16, #tpu.memory_space<vmem>>, %arg5: memref<1x128xf32, #tpu.memory_space<vmem>>, %arg6: memref<1x128xf32, #tpu.memory_space<vmem>>, %arg7: memref<1x128xf32, #tpu.memory_space<vmem>>, %arg8: memref<1x128xf32, #tpu.memory_space<vmem>>, %arg9: memref<1x128xf32, #tpu.memory_space<vmem>>, %arg10: memref<2x128x128xbf16, #tpu.memory_space<vmem>>, %arg11: memref<2x1x128xf32, #tpu.memory_space<vmem>>, %arg12: memref<2x128x128xbf16, #tpu.memory_space<vmem>>, %arg13: memref<2x1x128xf32, #tpu.memory_space<vmem>>, %arg14: memref<2x1x128xf32, #tpu.memory_space<vmem>>, %arg15: memref<2x1x128xf32, #tpu.memory_space<vmem>>, %arg16: memref<2x1x128xf32, #tpu.memory_space<vmem>>, %arg17: memref<2x1x128xf32, #tpu.memory_space<vmem>>, %arg18: memref<8x128xbf16, #tpu.memory_space<vmem>>, %arg19: memref<8x1xf32, #tpu.memory_space<vmem>>, %arg20: memref<128x128xbf16, #tpu.memory_space<vmem>>, %arg21: memref<1x128xf32, #tpu.memory_space<vmem>>, %arg22: memref<128x128xbf16, #tpu.memory_space<vmem>>, %arg23: memref<1x128xf32, #tpu.memory_space<vmem>>, %arg24: memref<8x128xf32, #tpu.memory_space<vmem>>, %arg25: memref<128x128xf32, #tpu.memory_space<vmem>>) attributes {dimension_semantics = [], scalar_prefetch = 0 : i64, scratch_operands = 1 : i64, tpu.core_type = #tpu.core_type<tc>} {
    %c0 = arith.constant 0 : index
    %c0_0 = arith.constant 0 : index
    %0 = vector.load %arg1[%c0, %c0_0] : memref<128x128xbf16, #tpu.memory_space<vmem>>, vector<128x128xbf16>
    %c0_1 = arith.constant 0 : index
    %c0_2 = arith.constant 0 : index
    %1 = vector.load %arg0[%c0_1, %c0_2] : memref<128x128xbf16, #tpu.memory_space<vmem>>, vector<128x128xbf16>
    %cst = arith.constant dense<0.000000e+00> : vector<128x128xf32>
    %2 = tpu.matmul %1, %0, %cst {dimension_numbers = #tpu.dot_dimension_numbers<[1], [0], [0], [1], [0, 0, 1, 1], [], []>} : vector<128x128xbf16>, vector<128x128xbf16>, vector<128x128xf32> -> vector<128x128xf32>
    %3 = arith.extf %0 : vector<128x128xbf16> to vector<128x128xf32>
    %4 = arith.addf %2, %3 : vector<128x128xf32>
    %c0_3 = arith.constant 0 : index
    %c0_4 = arith.constant 0 : index
    %5 = vector.load %arg2[%c0_3, %c0_4] : memref<128x128xbf16, #tpu.memory_space<vmem>>, vector<128x128xbf16>
    %c0_5 = arith.constant 0 : index
    %c0_6 = arith.constant 0 : index
    %6 = vector.load %arg3[%c0_5, %c0_6] : memref<1x128xf32, #tpu.memory_space<vmem>>, vector<1x128xf32>
    %c0_7 = arith.constant 0 : index
    %c0_8 = arith.constant 0 : index
    %7 = vector.load %arg4[%c0_7, %c0_8] : memref<128x128xbf16, #tpu.memory_space<vmem>>, vector<128x128xbf16>
    %c0_9 = arith.constant 0 : index
    %c0_10 = arith.constant 0 : index
    %8 = vector.load %arg5[%c0_9, %c0_10] : memref<1x128xf32, #tpu.memory_space<vmem>>, vector<1x128xf32>
    %c0_11 = arith.constant 0 : index
    %c0_12 = arith.constant 0 : index
    %9 = vector.load %arg6[%c0_11, %c0_12] : memref<1x128xf32, #tpu.memory_space<vmem>>, vector<1x128xf32>
    %c0_13 = arith.constant 0 : index
    %c0_14 = arith.constant 0 : index
    %10 = vector.load %arg7[%c0_13, %c0_14] : memref<1x128xf32, #tpu.memory_space<vmem>>, vector<1x128xf32>
    %c0_15 = arith.constant 0 : index
    %c0_16 = arith.constant 0 : index
    %11 = vector.load %arg8[%c0_15, %c0_16] : memref<1x128xf32, #tpu.memory_space<vmem>>, vector<1x128xf32>
    %c0_17 = arith.constant 0 : index
    %c0_18 = arith.constant 0 : index
    %12 = vector.load %arg9[%c0_17, %c0_18] : memref<1x128xf32, #tpu.memory_space<vmem>>, vector<1x128xf32>
    %13 = arith.truncf %4 : vector<128x128xf32> to vector<128x128xbf16>
    %cst_19 = arith.constant dense<0.000000e+00> : vector<128x128xf32>
    %14 = tpu.matmul %13, %5, %cst_19 {dimension_numbers = #tpu.dot_dimension_numbers<[1], [0], [0], [1], [0, 0, 1, 1], [], []>} : vector<128x128xbf16>, vector<128x128xbf16>, vector<128x128xf32> -> vector<128x128xf32>
    %15 = vector.broadcast %6 : vector<1x128xf32> to vector<128x128xf32>
    %16 = arith.addf %14, %15 : vector<128x128xf32>
    %cst_20 = arith.constant 0.000000e+00 : f32
    %17 = vector.broadcast %cst_20 : f32 to vector<128x128xf32>
    %18 = arith.maximumf %16, %17 : vector<128x128xf32>
    %19 = arith.truncf %18 : vector<128x128xf32> to vector<128x128xbf16>
    %cst_21 = arith.constant dense<0.000000e+00> : vector<128x128xf32>
    %20 = tpu.matmul %19, %7, %cst_21 {dimension_numbers = #tpu.dot_dimension_numbers<[1], [0], [0], [1], [0, 0, 1, 1], [], []>} : vector<128x128xbf16>, vector<128x128xbf16>, vector<128x128xf32> -> vector<128x128xf32>
    %21 = vector.broadcast %8 : vector<1x128xf32> to vector<128x128xf32>
    %22 = arith.addf %20, %21 : vector<128x128xf32>
    %cst_22 = arith.constant 0.000000e+00 : f32
    %23 = vector.broadcast %cst_22 : f32 to vector<128x128xf32>
    %24 = arith.maximumf %22, %23 : vector<128x128xf32>
    %cst_23 = arith.constant 9.99999974E-6 : f32
    %25 = vector.broadcast %cst_23 : f32 to vector<1x128xf32>
    %26 = arith.addf %12, %25 : vector<1x128xf32>
    %27 = math.rsqrt %26 : vector<1x128xf32>
    %28 = vector.broadcast %11 : vector<1x128xf32> to vector<128x128xf32>
    %29 = arith.subf %24, %28 : vector<128x128xf32>
    %30 = vector.broadcast %27 : vector<1x128xf32> to vector<128x128xf32>
    %31 = arith.mulf %29, %30 : vector<128x128xf32>
    %32 = vector.broadcast %9 : vector<1x128xf32> to vector<128x128xf32>
    %33 = arith.mulf %31, %32 : vector<128x128xf32>
    %34 = vector.broadcast %10 : vector<1x128xf32> to vector<128x128xf32>
    %35 = arith.addf %33, %34 : vector<128x128xf32>
    %36 = tpu.iota {dimensions = array<i32: 0>} : vector<128x128xi32>
    %c16_i32 = arith.constant 16 : i32
    %37 = vector.broadcast %c16_i32 : i32 to vector<128x128xi32>
    %38 = arith.cmpi slt, %36, %37 : vector<128x128xi32>
    %cst_24 = arith.constant 0.000000e+00 : f32
    %39 = vector.broadcast %cst_24 : f32 to vector<128x128xf32>
    %40 = arith.select %38, %35, %39 : vector<128x128xi1>, vector<128x128xf32>
    %c0_25 = arith.constant 0 : index
    %c0_26 = arith.constant 0 : index
    %41 = vector.load %arg25[%c0_25, %c0_26] : memref<128x128xf32, #tpu.memory_space<vmem>>, vector<128x128xf32>
    tpu.vector_store %arg25[%c0_25, %c0_26], %40 {strides = array<i32>} : memref<128x128xf32, #tpu.memory_space<vmem>>, vector<128x128xf32>,
    %c0_27 = arith.constant 0 : index
    %c0_28 = arith.constant 0 : index
    %42 = vector.load %arg25[%c0_27, %c0_28] : memref<128x128xf32, #tpu.memory_space<vmem>>, vector<128x128xf32>
    %c0_29 = arith.constant 0 : index
    %c0_30 = arith.constant 0 : index
    %43 = vector.load %arg0[%c0_29, %c0_30] : memref<128x128xbf16, #tpu.memory_space<vmem>>, vector<128x128xbf16>
    %44 = arith.truncf %42 : vector<128x128xf32> to vector<128x128xbf16>
    %cst_31 = arith.constant dense<0.000000e+00> : vector<128x128xf32>
    %45 = tpu.matmul %43, %44, %cst_31 {dimension_numbers = #tpu.dot_dimension_numbers<[1], [0], [0], [1], [0, 0, 1, 1], [], []>} : vector<128x128xbf16>, vector<128x128xbf16>, vector<128x128xf32> -> vector<128x128xf32>
    %46 = arith.addf %45, %42 : vector<128x128xf32>
    %c0_32 = arith.constant 0 : index
    %c0_33 = arith.constant 0 : index
    %c0_34 = arith.constant 0 : index
    %47 = vector.load %arg10[%c0_32, %c0_33, %c0_34] : memref<2x128x128xbf16, #tpu.memory_space<vmem>>, vector<1x128x128xbf16>
    %48 = vector.shape_cast %47 : vector<1x128x128xbf16> to vector<128x128xbf16>
    %c0_35 = arith.constant 0 : index
    %c0_36 = arith.constant 0 : index
    %c0_37 = arith.constant 0 : index
    %49 = vector.load %arg11[%c0_35, %c0_36, %c0_37] : memref<2x1x128xf32, #tpu.memory_space<vmem>>, vector<1x1x128xf32>
    %50 = vector.shape_cast %49 : vector<1x1x128xf32> to vector<1x128xf32>
    %c0_38 = arith.constant 0 : index
    %c0_39 = arith.constant 0 : index
    %c0_40 = arith.constant 0 : index
    %51 = vector.load %arg12[%c0_38, %c0_39, %c0_40] : memref<2x128x128xbf16, #tpu.memory_space<vmem>>, vector<1x128x128xbf16>
    %52 = vector.shape_cast %51 : vector<1x128x128xbf16> to vector<128x128xbf16>
    %c0_41 = arith.constant 0 : index
    %c0_42 = arith.constant 0 : index
    %c0_43 = arith.constant 0 : index
    %53 = vector.load %arg13[%c0_41, %c0_42, %c0_43] : memref<2x1x128xf32, #tpu.memory_space<vmem>>, vector<1x1x128xf32>
    %54 = vector.shape_cast %53 : vector<1x1x128xf32> to vector<1x128xf32>
    %c0_44 = arith.constant 0 : index
    %c0_45 = arith.constant 0 : index
    %c0_46 = arith.constant 0 : index
    %55 = vector.load %arg14[%c0_44, %c0_45, %c0_46] : memref<2x1x128xf32, #tpu.memory_space<vmem>>, vector<1x1x128xf32>
    %56 = vector.shape_cast %55 : vector<1x1x128xf32> to vector<1x128xf32>
    %c0_47 = arith.constant 0 : index
    %c0_48 = arith.constant 0 : index
    %c0_49 = arith.constant 0 : index
    %57 = vector.load %arg15[%c0_47, %c0_48, %c0_49] : memref<2x1x128xf32, #tpu.memory_space<vmem>>, vector<1x1x128xf32>
    %58 = vector.shape_cast %57 : vector<1x1x128xf32> to vector<1x128xf32>
    %c0_50 = arith.constant 0 : index
    %c0_51 = arith.constant 0 : index
    %c0_52 = arith.constant 0 : index
    %59 = vector.load %arg16[%c0_50, %c0_51, %c0_52] : memref<2x1x128xf32, #tpu.memory_space<vmem>>, vector<1x1x128xf32>
    %60 = vector.shape_cast %59 : vector<1x1x128xf32> to vector<1x128xf32>
    %c0_53 = arith.constant 0 : index
    %c0_54 = arith.constant 0 : index
    %c0_55 = arith.constant 0 : index
    %61 = vector.load %arg17[%c0_53, %c0_54, %c0_55] : memref<2x1x128xf32, #tpu.memory_space<vmem>>, vector<1x1x128xf32>
    %62 = vector.shape_cast %61 : vector<1x1x128xf32> to vector<1x128xf32>
    %63 = arith.truncf %46 : vector<128x128xf32> to vector<128x128xbf16>
    %cst_56 = arith.constant dense<0.000000e+00> : vector<128x128xf32>
    %64 = tpu.matmul %63, %48, %cst_56 {dimension_numbers = #tpu.dot_dimension_numbers<[1], [0], [0], [1], [0, 0, 1, 1], [], []>} : vector<128x128xbf16>, vector<128x128xbf16>, vector<128x128xf32> -> vector<128x128xf32>
    %65 = vector.broadcast %50 : vector<1x128xf32> to vector<128x128xf32>
    %66 = arith.addf %64, %65 : vector<128x128xf32>
    %cst_57 = arith.constant 0.000000e+00 : f32
    %67 = vector.broadcast %cst_57 : f32 to vector<128x128xf32>
    %68 = arith.maximumf %66, %67 : vector<128x128xf32>
    %69 = arith.truncf %68 : vector<128x128xf32> to vector<128x128xbf16>
    %cst_58 = arith.constant dense<0.000000e+00> : vector<128x128xf32>
    %70 = tpu.matmul %69, %52, %cst_58 {dimension_numbers = #tpu.dot_dimension_numbers<[1], [0], [0], [1], [0, 0, 1, 1], [], []>} : vector<128x128xbf16>, vector<128x128xbf16>, vector<128x128xf32> -> vector<128x128xf32>
    %71 = vector.broadcast %54 : vector<1x128xf32> to vector<128x128xf32>
    %72 = arith.addf %70, %71 : vector<128x128xf32>
    %cst_59 = arith.constant 0.000000e+00 : f32
    %73 = vector.broadcast %cst_59 : f32 to vector<128x128xf32>
    %74 = arith.maximumf %72, %73 : vector<128x128xf32>
    %cst_60 = arith.constant 9.99999974E-6 : f32
    %75 = vector.broadcast %cst_60 : f32 to vector<1x128xf32>
    %76 = arith.addf %62, %75 : vector<1x128xf32>
    %77 = math.rsqrt %76 : vector<1x128xf32>
    %78 = vector.broadcast %60 : vector<1x128xf32> to vector<128x128xf32>
    %79 = arith.subf %74, %78 : vector<128x128xf32>
    %80 = vector.broadcast %77 : vector<1x128xf32> to vector<128x128xf32>
    %81 = arith.mulf %79, %80 : vector<128x128xf32>
    %82 = vector.broadcast %56 : vector<1x128xf32> to vector<128x128xf32>
    %83 = arith.mulf %81, %82 : vector<128x128xf32>
    %84 = vector.broadcast %58 : vector<1x128xf32> to vector<128x128xf32>
    %85 = arith.addf %83, %84 : vector<128x128xf32>
    %86 = tpu.iota {dimensions = array<i32: 0>} : vector<128x128xi32>
    %c16_i32_61 = arith.constant 16 : i32
    %87 = vector.broadcast %c16_i32_61 : i32 to vector<128x128xi32>
    %88 = arith.cmpi slt, %86, %87 : vector<128x128xi32>
    %cst_62 = arith.constant 0.000000e+00 : f32
    %89 = vector.broadcast %cst_62 : f32 to vector<128x128xf32>
    %90 = arith.select %88, %85, %89 : vector<128x128xi1>, vector<128x128xf32>
    %c0_63 = arith.constant 0 : index
    %c0_64 = arith.constant 0 : index
    %91 = vector.load %arg25[%c0_63, %c0_64] : memref<128x128xf32, #tpu.memory_space<vmem>>, vector<128x128xf32>
    tpu.vector_store %arg25[%c0_63, %c0_64], %90 {strides = array<i32>} : memref<128x128xf32, #tpu.memory_space<vmem>>, vector<128x128xf32>,
    %c0_65 = arith.constant 0 : index
    %c0_66 = arith.constant 0 : index
    %92 = vector.load %arg25[%c0_65, %c0_66] : memref<128x128xf32, #tpu.memory_space<vmem>>, vector<128x128xf32>
    %c0_67 = arith.constant 0 : index
    %c0_68 = arith.constant 0 : index
    %93 = vector.load %arg0[%c0_67, %c0_68] : memref<128x128xbf16, #tpu.memory_space<vmem>>, vector<128x128xbf16>
    %94 = arith.truncf %92 : vector<128x128xf32> to vector<128x128xbf16>
    %cst_69 = arith.constant dense<0.000000e+00> : vector<128x128xf32>
    %95 = tpu.matmul %93, %94, %cst_69 {dimension_numbers = #tpu.dot_dimension_numbers<[1], [0], [0], [1], [0, 0, 1, 1], [], []>} : vector<128x128xbf16>, vector<128x128xbf16>, vector<128x128xf32> -> vector<128x128xf32>
    %96 = arith.addf %95, %92 : vector<128x128xf32>
    %c1 = arith.constant 1 : index
    %c0_70 = arith.constant 0 : index
    %c0_71 = arith.constant 0 : index
    %97 = vector.load %arg10[%c1, %c0_70, %c0_71] : memref<2x128x128xbf16, #tpu.memory_space<vmem>>, vector<1x128x128xbf16>
    %98 = vector.shape_cast %97 : vector<1x128x128xbf16> to vector<128x128xbf16>
    %c1_72 = arith.constant 1 : index
    %c0_73 = arith.constant 0 : index
    %c0_74 = arith.constant 0 : index
    %99 = vector.load %arg11[%c1_72, %c0_73, %c0_74] : memref<2x1x128xf32, #tpu.memory_space<vmem>>, vector<1x1x128xf32>
    %100 = vector.shape_cast %99 : vector<1x1x128xf32> to vector<1x128xf32>
    %c1_75 = arith.constant 1 : index
    %c0_76 = arith.constant 0 : index
    %c0_77 = arith.constant 0 : index
    %101 = vector.load %arg12[%c1_75, %c0_76, %c0_77] : memref<2x128x128xbf16, #tpu.memory_space<vmem>>, vector<1x128x128xbf16>
    %102 = vector.shape_cast %101 : vector<1x128x128xbf16> to vector<128x128xbf16>
    %c1_78 = arith.constant 1 : index
    %c0_79 = arith.constant 0 : index
    %c0_80 = arith.constant 0 : index
    %103 = vector.load %arg13[%c1_78, %c0_79, %c0_80] : memref<2x1x128xf32, #tpu.memory_space<vmem>>, vector<1x1x128xf32>
    %104 = vector.shape_cast %103 : vector<1x1x128xf32> to vector<1x128xf32>
    %c1_81 = arith.constant 1 : index
    %c0_82 = arith.constant 0 : index
    %c0_83 = arith.constant 0 : index
    %105 = vector.load %arg14[%c1_81, %c0_82, %c0_83] : memref<2x1x128xf32, #tpu.memory_space<vmem>>, vector<1x1x128xf32>
    %106 = vector.shape_cast %105 : vector<1x1x128xf32> to vector<1x128xf32>
    %c1_84 = arith.constant 1 : index
    %c0_85 = arith.constant 0 : index
    %c0_86 = arith.constant 0 : index
    %107 = vector.load %arg15[%c1_84, %c0_85, %c0_86] : memref<2x1x128xf32, #tpu.memory_space<vmem>>, vector<1x1x128xf32>
    %108 = vector.shape_cast %107 : vector<1x1x128xf32> to vector<1x128xf32>
    %c1_87 = arith.constant 1 : index
    %c0_88 = arith.constant 0 : index
    %c0_89 = arith.constant 0 : index
    %109 = vector.load %arg16[%c1_87, %c0_88, %c0_89] : memref<2x1x128xf32, #tpu.memory_space<vmem>>, vector<1x1x128xf32>
    %110 = vector.shape_cast %109 : vector<1x1x128xf32> to vector<1x128xf32>
    %c1_90 = arith.constant 1 : index
    %c0_91 = arith.constant 0 : index
    %c0_92 = arith.constant 0 : index
    %111 = vector.load %arg17[%c1_90, %c0_91, %c0_92] : memref<2x1x128xf32, #tpu.memory_space<vmem>>, vector<1x1x128xf32>
    %112 = vector.shape_cast %111 : vector<1x1x128xf32> to vector<1x128xf32>
    %113 = arith.truncf %96 : vector<128x128xf32> to vector<128x128xbf16>
    %cst_93 = arith.constant dense<0.000000e+00> : vector<128x128xf32>
    %114 = tpu.matmul %113, %98, %cst_93 {dimension_numbers = #tpu.dot_dimension_numbers<[1], [0], [0], [1], [0, 0, 1, 1], [], []>} : vector<128x128xbf16>, vector<128x128xbf16>, vector<128x128xf32> -> vector<128x128xf32>
    %115 = vector.broadcast %100 : vector<1x128xf32> to vector<128x128xf32>
    %116 = arith.addf %114, %115 : vector<128x128xf32>
    %cst_94 = arith.constant 0.000000e+00 : f32
    %117 = vector.broadcast %cst_94 : f32 to vector<128x128xf32>
    %118 = arith.maximumf %116, %117 : vector<128x128xf32>
    %119 = arith.truncf %118 : vector<128x128xf32> to vector<128x128xbf16>
    %cst_95 = arith.constant dense<0.000000e+00> : vector<128x128xf32>
    %120 = tpu.matmul %119, %102, %cst_95 {dimension_numbers = #tpu.dot_dimension_numbers<[1], [0], [0], [1], [0, 0, 1, 1], [], []>} : vector<128x128xbf16>, vector<128x128xbf16>, vector<128x128xf32> -> vector<128x128xf32>
    %121 = vector.broadcast %104 : vector<1x128xf32> to vector<128x128xf32>
    %122 = arith.addf %120, %121 : vector<128x128xf32>
    %cst_96 = arith.constant 0.000000e+00 : f32
    %123 = vector.broadcast %cst_96 : f32 to vector<128x128xf32>
    %124 = arith.maximumf %122, %123 : vector<128x128xf32>
    %cst_97 = arith.constant 9.99999974E-6 : f32
    %125 = vector.broadcast %cst_97 : f32 to vector<1x128xf32>
    %126 = arith.addf %112, %125 : vector<1x128xf32>
    %127 = math.rsqrt %126 : vector<1x128xf32>
    %128 = vector.broadcast %110 : vector<1x128xf32> to vector<128x128xf32>
    %129 = arith.subf %124, %128 : vector<128x128xf32>
    %130 = vector.broadcast %127 : vector<1x128xf32> to vector<128x128xf32>
    %131 = arith.mulf %129, %130 : vector<128x128xf32>
    %132 = vector.broadcast %106 : vector<1x128xf32> to vector<128x128xf32>
    %133 = arith.mulf %131, %132 : vector<128x128xf32>
    %134 = vector.broadcast %108 : vector<1x128xf32> to vector<128x128xf32>
    %135 = arith.addf %133, %134 : vector<128x128xf32>
    %136 = tpu.iota {dimensions = array<i32: 0>} : vector<128x128xi32>
    %c16_i32_98 = arith.constant 16 : i32
    %137 = vector.broadcast %c16_i32_98 : i32 to vector<128x128xi32>
    %138 = arith.cmpi slt, %136, %137 : vector<128x128xi32>
    %cst_99 = arith.constant 0.000000e+00 : f32
    %139 = vector.broadcast %cst_99 : f32 to vector<128x128xf32>
    %140 = arith.select %138, %135, %139 : vector<128x128xi1>, vector<128x128xf32>
    %c0_100 = arith.constant 0 : index
    %c0_101 = arith.constant 0 : index
    %141 = vector.load %arg25[%c0_100, %c0_101] : memref<128x128xf32, #tpu.memory_space<vmem>>, vector<128x128xf32>
    tpu.vector_store %arg25[%c0_100, %c0_101], %140 {strides = array<i32>} : memref<128x128xf32, #tpu.memory_space<vmem>>, vector<128x128xf32>,
    %c0_102 = arith.constant 0 : index
    %c0_103 = arith.constant 0 : index
    %142 = vector.load %arg25[%c0_102, %c0_103] : memref<128x128xf32, #tpu.memory_space<vmem>>, vector<128x128xf32>
    %143 = arith.truncf %142 : vector<128x128xf32> to vector<128x128xbf16>
    %c0_104 = arith.constant 0 : index
    %c0_105 = arith.constant 0 : index
    %144 = vector.load %arg18[%c0_104, %c0_105] : memref<8x128xbf16, #tpu.memory_space<vmem>>, vector<8x128xbf16>
    %cst_106 = arith.constant dense<0.000000e+00> : vector<8x128xf32>
    %145 = tpu.matmul %144, %143, %cst_106 {dimension_numbers = #tpu.dot_dimension_numbers<[1], [0], [0], [1], [0, 0, 1, 1], [], []>} : vector<8x128xbf16>, vector<128x128xbf16>, vector<8x128xf32> -> vector<8x128xf32>
    %c0_107 = arith.constant 0 : index
    %c0_108 = arith.constant 0 : index
    %146 = vector.load %arg19[%c0_107, %c0_108] : memref<8x1xf32, #tpu.memory_space<vmem>>, vector<8x1xf32>
    %147 = vector.broadcast %146 : vector<8x1xf32> to vector<8x128xf32>
    %148 = arith.mulf %145, %147 : vector<8x128xf32>
    %149 = arith.truncf %148 : vector<8x128xf32> to vector<8x128xbf16>
    %c0_109 = arith.constant 0 : index
    %c0_110 = arith.constant 0 : index
    %150 = vector.load %arg20[%c0_109, %c0_110] : memref<128x128xbf16, #tpu.memory_space<vmem>>, vector<128x128xbf16>
    %cst_111 = arith.constant dense<0.000000e+00> : vector<8x128xf32>
    %151 = tpu.matmul %149, %150, %cst_111 {dimension_numbers = #tpu.dot_dimension_numbers<[1], [0], [0], [1], [0, 0, 1, 1], [], []>} : vector<8x128xbf16>, vector<128x128xbf16>, vector<8x128xf32> -> vector<8x128xf32>
    %c0_112 = arith.constant 0 : index
    %c0_113 = arith.constant 0 : index
    %152 = vector.load %arg21[%c0_112, %c0_113] : memref<1x128xf32, #tpu.memory_space<vmem>>, vector<1x128xf32>
    %153 = vector.broadcast %152 : vector<1x128xf32> to vector<8x128xf32>
    %154 = arith.addf %151, %153 : vector<8x128xf32>
    %cst_114 = arith.constant 0.000000e+00 : f32
    %155 = vector.broadcast %cst_114 : f32 to vector<8x128xf32>
    %156 = arith.maximumf %154, %155 : vector<8x128xf32>
    %157 = arith.truncf %156 : vector<8x128xf32> to vector<8x128xbf16>
    %c0_115 = arith.constant 0 : index
    %c0_116 = arith.constant 0 : index
    %158 = vector.load %arg22[%c0_115, %c0_116] : memref<128x128xbf16, #tpu.memory_space<vmem>>, vector<128x128xbf16>
    %cst_117 = arith.constant dense<0.000000e+00> : vector<8x128xf32>
    %159 = tpu.matmul %157, %158, %cst_117 {dimension_numbers = #tpu.dot_dimension_numbers<[1], [0], [0], [1], [0, 0, 1, 1], [], []>} : vector<8x128xbf16>, vector<128x128xbf16>, vector<8x128xf32> -> vector<8x128xf32>
    %c0_118 = arith.constant 0 : index
    %c0_119 = arith.constant 0 : index
    %160 = vector.load %arg23[%c0_118, %c0_119] : memref<1x128xf32, #tpu.memory_space<vmem>>, vector<1x128xf32>
    %161 = vector.broadcast %160 : vector<1x128xf32> to vector<8x128xf32>
    %162 = arith.addf %159, %161 : vector<8x128xf32>
    %163 = tpu.iota {dimensions = array<i32: 1>} : vector<8x128xi32>
    %c4_i32 = arith.constant 4 : i32
    %164 = vector.broadcast %c4_i32 : i32 to vector<8x128xi32>
    %165 = arith.cmpi slt, %163, %164 : vector<8x128xi32>
    %cst_120 = arith.constant -1.000000e+30 : f32
    %166 = vector.broadcast %cst_120 : f32 to vector<8x128xf32>
    %167 = arith.select %165, %162, %166 : vector<8x128xi1>, vector<8x128xf32>
    %cst_121 = arith.constant dense<0xFF800000> : vector<8xf32>
    %168 = vector.multi_reduction <maximumf>, %167, %cst_121 [1] : vector<8x128xf32> to vector<8xf32>
    %169 = vector.shape_cast %168 : vector<8xf32> to vector<8x1xf32>
    %170 = vector.broadcast %169 : vector<8x1xf32> to vector<8x128xf32>
    %171 = arith.subf %167, %170 : vector<8x128xf32>
    %172 = math.exp %171 : vector<8x128xf32>
    %cst_122 = arith.constant dense<0.000000e+00> : vector<8xf32>
    %173 = vector.multi_reduction <add>, %172, %cst_122 [1] : vector<8x128xf32> to vector<8xf32>
    %174 = vector.shape_cast %173 : vector<8xf32> to vector<8x1xf32>
    %175 = math.log %174 : vector<8x1xf32>
    %176 = vector.broadcast %175 : vector<8x1xf32> to vector<8x128xf32>
    %177 = arith.subf %171, %176 : vector<8x128xf32>
    %c0_123 = arith.constant 0 : index
    %c0_124 = arith.constant 0 : index
    %178 = vector.load %arg24[%c0_123, %c0_124] : memref<8x128xf32, #tpu.memory_space<vmem>>, vector<8x128xf32>
    tpu.vector_store %arg24[%c0_123, %c0_124], %177 {strides = array<i32>} : memref<8x128xf32, #tpu.memory_space<vmem>>, vector<8x128xf32>,
    return
  }
}

</mosaic_0001>

<bundles_post_ra>
// kernel: gin0_forward.1
= control target key start
LH: loop header
LB: loop body
LE: loop exit
PB: predicated region body
PF: predicated region fallthrough
CT: control target
= control target key end

     0   :  { %vm3302_vm0 = vmmov 0   ;;  %s3918_s1 = inlined_call_operand.vmem [shape: bf16[128,128], index: 1, kind: input, shape index: {}]   ;;  %s3919_s0 = inlined_call_operand.vmem [shape: bf16[128,128], index: 0, kind: input, shape index: {}]   ;;  %s3920_s2 = inlined_call_operand.vmem [shape: bf16[128,128], index: 2, kind: input, shape index: {}]   ;;  %s3921_s4 = inlined_call_operand.vmem [shape: bf16[128,128], index: 4, kind: input, shape index: {}]   ;;  %s3922_s3 = inlined_call_operand.vmem [shape: f32[1,128], index: 3, kind: input, shape index: {}]   ;;  %s3923_s10 = inlined_call_operand.vmem [shape: bf16[2,128,128], index: 10, kind: input, shape index: {}]   ;;  %s3924_s9 = inlined_call_operand.vmem [shape: f32[1,128], index: 9, kind: input, shape index: {}]   ;;  %s3925_s5 = inlined_call_operand.vmem [shape: f32[1,128], index: 5, kind: input, shape index: {}]   ;;  %s3926_s8 = inlined_call_operand.vmem [shape: f32[1,128], index: 8, kind: input, shape index: {}]   ;;  %s3927_s6 = inlined_call_operand.vmem [shape: f32[1,128], index: 6, kind: input, shape index: {}]   ;;  %s3928_s7 = inlined_call_operand.vmem [shape: f32[1,128], index: 7, kind: input, shape index: {}]   ;;  %s3929_s12 = inlined_call_operand.vmem [shape: bf16[2,128,128], index: 12, kind: input, shape index: {}]   ;;  %s3930_s11 = inlined_call_operand.vmem [shape: f32[2,1,128], index: 11, kind: input, shape index: {}]   ;;  %s3931_s17 = inlined_call_operand.vmem [shape: f32[2,1,128], index: 17, kind: input, shape index: {}]   ;;  %s3932_s13 = inlined_call_operand.vmem [shape: f32[2,1,128], index: 13, kind: input, shape index: {}]   ;;  %s3933_s16 = inlined_call_operand.vmem [shape: f32[2,1,128], index: 16, kind: input, shape index: {}]   ;;  %s3934_s14 = inlined_call_operand.vmem [shape: f32[2,1,128], index: 14, kind: input, shape index: {}]   ;;  %s3935_s15 = inlined_call_operand.vmem [shape: f32[2,1,128], index: 15, kind: input, shape index: {}]   ;;  %s3936_s19 = inlined_call_operand.vmem [shape: f32[8,1], index: 19, kind: input, shape index: {}]   ;;  %s3937_s20 = inlined_call_operand.vmem [shape: bf16[128,128], index: 20, kind: input, shape index: {}]   ;;  %s3938_s18 = inlined_call_operand.vmem [shape: bf16[8,128], index: 18, kind: input, shape index: {}]   ;;  %s3939_s22 = inlined_call_operand.vmem [shape: bf16[128,128], index: 22, kind: input, shape index: {}]   ;;  %s3940_s21 = inlined_call_operand.vmem [shape: f32[1,128], index: 21, kind: input, shape index: {}]   ;;  %s3941_s23 = inlined_call_operand.vmem [shape: f32[1,128], index: 23, kind: input, shape index: {}]   ;;  %s3942_s24 = inlined_call_operand.vmem [shape: f32[8,128], index: 24, kind: output, shape index: {}]  }
   0x1   :  { %3948 = sst [smem:[#allocation3_spill]] %s3918_s1 }
   0x2   :  { %3949 = sst [smem:[#allocation4_spill]] %s3919_s0  ;;  %s3957_s27 = sld [smem:[#allocation3_spill]] }
   0x3   :  { %3950 = sst [smem:[#allocation5_spill]] %s3920_s2  ;;  %s3958_s30 = sld [smem:[#allocation4_spill]] }
   0x4   :  { %3951 = sst [smem:[#allocation6_spill]] %s3921_s4  ;;  %s3959_s0 = sld [smem:[#allocation5_spill]] }
   0x5   :  { %3952 = sst [smem:[#allocation7_spill]] %s3922_s3 }
   0x6   :  { %3953 = sst [smem:[#allocation8_spill]] %s3923_s10  ;;  %s3961_s28 = sld [smem:[#allocation7_spill]] }
   0x7   :  { %3954 = sst [smem:[#allocation9_spill]] %s3924_s9 }
   0x8   :  { %3955 = sst [smem:[#allocation10_spill]] %s3925_s5  ;;  %v3432_v0 = vld [vmem:[%s3957_s27] sm:$0xff]   ;;  %v3437_v1 = vld [vmem:[%s3957_s27 + $0x8] sm:$0xff]   ;;  %v3442_v2 = vld [vmem:[%s3957_s27 + $0x10] sm:$0xff]   ;;  %s3960_s5 = sld [smem:[#allocation6_spill]] }
   0x9   :  { %3956 = sst [smem:[#allocation11_spill]] %s3926_s8  ;;  %2877 = vmatprep.subr.bf16.mxu0 %v3432_v0  ;;  %v3195_v3 = vld [vmem:[%s3958_s30] sm:$0xff]   ;;  %v3452_v4 = vld [vmem:[%s3957_s27 + $0x18] sm:$0xff]   ;;  %v3478_v10 = vld [vmem:[%s3957_s27 + $0x28] sm:$0xff]   ;;  %v112_v30 = vunpack.c.l.bf16 %v3437_v1  ;;  %v113_v31 = vunpack.c.h.bf16 %v3437_v1  ;;  %v110_v33 = vunpack.c.l.bf16 %v3432_v0  ;;  %v111_v34 = vunpack.c.h.bf16 %v3432_v0  ;;  %s3963_s1 = sld [smem:[#allocation9_spill]] }
   0xa   :  { %2878 = vmatpush3.bf16.msra.mxu0 %v3432_v0  ;;  %2893 = vmatprep.mubr.bf16.mxu0 %v3195_v3  ;;  %v3197_v5 = vld [vmem:[%s3959_s0] sm:$0xff]   ;;  %v3198_v6 = vld [vmem:[%s3959_s0 + $0x8] sm:$0xff]   ;;  %v3199_v7 = vld [vmem:[%s3959_s0 + $0x10] sm:$0xff]   ;;  %v116_v46 = vunpack.c.l.bf16 %v3452_v4  ;;  %v114_v48 = vunpack.c.l.bf16 %v3442_v2  ;;  %v117_v49 = vunpack.c.h.bf16 %v3452_v4  ;;  %v115_v50 = vunpack.c.h.bf16 %v3442_v2  ;;  %s3964_s25 = sld [smem:[#allocation10_spill]]  ;;  %s3965_s10 = sld [smem:[#allocation11_spill]] }
   0xb   :  { %2879 = vmatprep.subr.bf16.mxu0 %v3437_v1  ;;  %2909 = vmatprep.subr.bf16.mxu1 %v3197_v5  ;;  %v3469_v8 = vld [vmem:[%s3957_s27 + $0x20] sm:$0xff]   ;;  %v3200_v9 = vld [vmem:[%s3959_s0 + $0x18] sm:$0xff]   ;;  %v3488_v12 = vld [vmem:[%s3957_s27 + $0x30] sm:$0xff]   ;;  %v120_v52 = vunpack.c.l.bf16 %v3478_v10  ;;  %v121_v59 = vunpack.c.h.bf16 %v3478_v10 }
   0xc   :  { %2910 = vmatpush3.bf16.msra.mxu1 %v3197_v5  ;;  %v3201_v11 = vld [vmem:[%s3959_s0 + $0x20] sm:$0xff]   ;;  %v3202_v13 = vld [vmem:[%s3959_s0 + $0x28] sm:$0xff]   ;;  %v3498_v14 = vld [vmem:[%s3957_s27 + $0x38] sm:$0xff]   ;;  %v118_v56 = vunpack.c.l.bf16 %v3469_v8  ;;  %v119_v62 = vunpack.c.h.bf16 %v3469_v8 }
   0xd   :  { %2911 = vmatprep.subr.bf16.mxu1 %v3198_v6  ;;  %v3196_v15 = vld [vmem:[%s3958_s30 + $0x8] sm:$0xff]   ;;  %v3203_v16 = vld [vmem:[%s3959_s0 + $0x30] sm:$0xff]   ;;  %v3204_v17 = vld [vmem:[%s3959_s0 + $0x38] sm:$0xff]   ;;  %s3962_s0 = sld [smem:[#allocation8_spill]] }
   0xe   :  { %2880 = vmatpush3.bf16.msra.mxu0 %v3437_v1  ;;  %v3205_v18 = vld [vmem:[%s3958_s30 + $0x10] sm:$0xff]   ;;  %v3206_v19 = vld [vmem:[%s3958_s30 + $0x18] sm:$0xff]   ;;  %v3208_v20 = vld [vmem:[%s3958_s30 + $0x20] sm:$0xff]  }
   0xf   :  { %2881 = vmatprep.subr.bf16.mxu0 %v3442_v2  ;;  %v3207_v21 = vld [vmem:[%s3960_s5] sm:$0xff]   ;;  %v3209_v22 = vld [vmem:[%s3960_s5 + $0x8] sm:$0xff]   ;;  %v3211_v23 = vld [vmem:[%s3960_s5 + $0x10] sm:$0xff]  }
  0x10   :  { %2912 = vmatpush3.bf16.msra.mxu1 %v3198_v6  ;;  %v3210_v24 = vld [vmem:[%s3958_s30 + $0x28] sm:$0xff]   ;;  %v3212_v25 = vld [vmem:[%s3958_s30 + $0x30] sm:$0xff]   ;;  %v3213_v26 = vld [vmem:[%s3960_s5 + $0x18] sm:$0xff]   ;;  %v122_v6 = vunpack.c.l.bf16 %v3488_v12 }
  0x11   :  { %2913 = vmatprep.subr.bf16.mxu1 %v3199_v7  ;;  %v3215_v27 = vld [vmem:[%s3960_s5 + $0x20] sm:$0xff]   ;;  %v3214_v28 = vld [vmem:[%s3958_s30 + $0x38] sm:$0xff]   ;;  %v3216_v29 = vld [vmem:[%s3960_s5 + $0x28] sm:$0xff]  }
  0x12   :  { %2882 = vmatpush3.bf16.msra.mxu0 %v3442_v2  ;;  %v3217_v44 = vld [vmem:[%s3960_s5 + $0x30] sm:$0xff]   ;;  %v3218_v45 = vld [vmem:[%s3960_s5 + $0x38] sm:$0xff]   ;;  %v124_v2 = vunpack.c.l.bf16 %v3498_v14 }
  0x13   :  { %2883 = vmatprep.subr.bf16.mxu0 %v3452_v4 }
  0x14   :  { %2914 = vmatpush3.bf16.msra.mxu1 %v3199_v7 }
  0x15   :  { %2915 = vmatprep.subr.bf16.mxu1 %v3200_v9 }
  0x16   :  { %2884 = vmatpush3.bf16.msra.mxu0 %v3452_v4 }
  0x17   :  { %2885 = vmatprep.subr.bf16.mxu0 %v3469_v8 }
  0x18   :  { %2916 = vmatpush3.bf16.msra.mxu1 %v3200_v9 }
  0x19   :  { %2917 = vmatprep.subr.bf16.mxu1 %v3201_v11 }
  0x1a   :  { %2886 = vmatpush3.bf16.msra.mxu0 %v3469_v8 }
  0x1b   :  { %2887 = vmatprep.subr.bf16.mxu0 %v3478_v10 }
  0x1c   :  { %2918 = vmatpush3.bf16.msra.mxu1 %v3201_v11  ;;  %v125_v11 = vunpack.c.h.bf16 %v3498_v14 }
  0x1d   :  { %2919 = vmatprep.subr.bf16.mxu1 %v3202_v13 }
  0x1e   :  { %2888 = vmatpush3.bf16.msra.mxu0 %v3478_v10 }
  0x1f   :  { %2889 = vmatprep.subr.bf16.mxu0 %v3488_v12 }
  0x20   :  { %2920 = vmatpush3.bf16.msra.mxu1 %v3202_v13 }
  0x21   :  { %2921 = vmatprep.subr.bf16.mxu1 %v3203_v16 }
  0x22   :  { %2890 = vmatpush3.bf16.msra.mxu0 %v3488_v12 }
  0x23   :  { %2891 = vmatprep.subr.bf16.mxu0 %v3498_v14 }
  0x24   :  { %2922 = vmatpush3.bf16.msra.mxu1 %v3203_v16 }
  0x25   :  { %2923 = vmatprep.subr.bf16.mxu1 %v3204_v17 }
  0x26   :  { %2892 = vmatpush3.bf16.msra.mxu0 %v3498_v14 }
  0x27   :  { %2941 = vmatprep.subr.bf16.mxu0 %v3207_v21 }
  0x28   :  { %2924 = vmatpush3.bf16.msra.mxu1 %v3204_v17 }
  0x29   :  { %2894 = vmatmul.mubr.bf16.vlgmr.msra.gmra.mrb[0].mxu0 %v3196_v15  ;;  %v123_v15 = vunpack.c.h.bf16 %v3488_v12  ;;  %v3576_v12 = vld [vmem:[%s3961_s28] ss:$0 sm:$0xff] }
  0x2a   :  { %2897 = vmatprep.mubr.bf16.mxu0 %v3205_v18  ;;  %2942 = vmatpush3.bf16.msra.mxu0 %v3207_v21 }
  0x2b   :  { %2943 = vmatprep.subr.bf16.mxu0 %v3209_v22 }
  0x2e   :  { %2944 = vmatpush3.bf16.msra.mxu0 %v3209_v22 }
  0x2f   :  { %2945 = vmatprep.subr.bf16.mxu0 %v3211_v23 }
  0x31   :  { %2898 = vmatmul.mubr.bf16.gmra.mrb[4].mxu0 %v3206_v19 }
  0x32   :  { %2901 = vmatprep.mubr.bf16.mxu0 %v3208_v20  ;;  %2946 = vmatpush3.bf16.msra.mxu0 %v3211_v23 }
  0x33   :  { %2947 = vmatprep.subr.bf16.mxu0 %v3213_v26 }
  0x36   :  { %2948 = vmatpush3.bf16.msra.mxu0 %v3213_v26 }
  0x37   :  { %2949 = vmatprep.subr.bf16.mxu0 %v3215_v27 }
  0x39   :  { %2902 = vmatmul.mubr.bf16.gmra.mrb[8].mxu0 %v3210_v24 }
  0x3a   :  { %2905 = vmatprep.mubr.bf16.mxu0 %v3212_v25  ;;  %2950 = vmatpush3.bf16.msra.mxu0 %v3215_v27 }
  0x3b   :  { %2951 = vmatprep.subr.bf16.mxu0 %v3216_v29 }
  0x3e   :  { %2952 = vmatpush3.bf16.msra.mxu0 %v3216_v29 }
  0x3f   :  { %2953 = vmatprep.subr.bf16.mxu0 %v3217_v44 }
  0x41   :  { %2906 = vmatmul.mubr.bf16.gmra.mrb[12].mxu0 %v3214_v28 }
  0x42   :  { %2954 = vmatpush3.bf16.msra.mxu0 %v3217_v44 }
  0x43   :  { %2955 = vmatprep.subr.bf16.mxu0 %v3218_v45 }
  0x46   :  { %2956 = vmatpush3.bf16.msra.mxu0 %v3218_v45 }
  0xfc   :  { %v2895_v32 = vpop.f32.mrb[0].mxu0 }
  0xfd   :  { %v256_v35 = vpop.f32.mrb[1].mxu0  ;;  %v265_v37 = vadd.f32 %v2895_v32, %v112_v30 }
  0xfe   :  { %v2896_v36 = vpop.f32.mrb[2].mxu0  ;;  %v257_v40 = vadd.f32 %v256_v35, %v110_v33 }
  0xff   :  { %v268_v38 = vadd.f32 %v2896_v36, %v113_v31  ;;  %v259_v39 = vpop.f32.mrb[3].mxu0 }
 0x100   :  { %v260_v41 = vadd.f32 %v259_v39, %v111_v34  ;;  %v3219_v39 = vld [vmem:[%s3958_s30] sm:$0xff]  }
 0x101   :  { %v358_v42 = vpack.c.bf16 %v268_v38, %v265_v37 }
 0x102   :  { %v357_v43 = vpack.c.bf16 %v260_v41, %v257_v40 }
 0x104   :  { %2925 = vmatprep.mubr.bf16.mxu1 %v357_v43  ;;  %v2899_v47 = vpop.f32.mrb[4].mxu0  ;;  %v3221_v43 = vld [vmem:[%s3962_s0] sm:$0xff]  }
 0x105   :  { %2926 = vmatmul.mubr.bf16.vlgmr.msra.gmra.mrb[0].mxu1 %v358_v42  ;;  %v272_v51 = vpop.f32.mrb[5].mxu0  ;;  %v281_v53 = vadd.f32 %v2899_v47, %v116_v46  ;;  %v3222_v46 = vld [vmem:[%s3962_s0 + $0x8] sm:$0xff]   ;;  %2991 = vmatprep.subr.bf16.mxu0 %v3221_v43 }
 0x106   :  { %v273_v54 = vadd.f32 %v272_v51, %v114_v48  ;;  %v2900_v55 = vpop.f32.mrb[6].mxu0 }
 0x107   :  { %v284_v57 = vadd.f32 %v2900_v55, %v117_v49  ;;  %v275_v58 = vpop.f32.mrb[7].mxu0 }
 0x108   :  { %v276_v60 = vadd.f32 %v275_v58, %v115_v50 }
 0x109   :  { %v360_v63 = vpack.c.bf16 %v284_v57, %v281_v53  ;;  %v3223_v53 = vld [vmem:[%s3962_s0 + $0x10] sm:$0xff]  }
 0x10a   :  { %v359_v3 = vpack.c.bf16 %v276_v60, %v273_v54 }
 0x10c   :  { %v2903_v61 = vpop.f32.mrb[8].mxu0  ;;  %2929 = vmatprep.mubr.bf16.mxu1 %v359_v3 }
 0x10d   :  { %v297_v0 = vadd.f32 %v2903_v61, %v120_v52  ;;  %v288_v1 = vpop.f32.mrb[9].mxu0  ;;  %2930 = vmatmul.mubr.bf16.gmra.mrb[4].mxu1 %v360_v63 }
 0x10e   :  { %v289_v4 = vadd.f32 %v288_v1, %v118_v56  ;;  %v2904_v5 = vpop.f32.mrb[10].mxu0 }
 0x10f   :  { %v300_v7 = vadd.f32 %v2904_v5, %v121_v59  ;;  %v291_v9 = vpop.f32.mrb[11].mxu0 }
 0x110   :  { %v292_v10 = vadd.f32 %v291_v9, %v119_v62 }
 0x111   :  { %v362_v8 = vpack.c.bf16 %v300_v7, %v297_v0  ;;  %v3224_v0 = vld [vmem:[%s3962_s0 + $0x18] sm:$0xff]  }
 0x112   :  { %v361_v18 = vpack.c.bf16 %v292_v10, %v289_v4 }
 0x114   :  { %v2907_v13 = vpop.f32.mrb[12].mxu0  ;;  %2933 = vmatprep.mubr.bf16.mxu1 %v361_v18 }
 0x115   :  { %v313_v16 = vadd.f32 %v2907_v13, %v124_v2  ;;  %v304_v17 = vpop.f32.mrb[13].mxu0  ;;  %2934 = vmatmul.mubr.bf16.gmra.mrb[8].mxu1 %v362_v8 }
 0x116   :  { %v305_v19 = vadd.f32 %v304_v17, %v122_v6  ;;  %v2908_v20 = vpop.f32.mrb[14].mxu0 }
 0x117   :  { %v316_v21 = vadd.f32 %v2908_v20, %v125_v11  ;;  %v307_v22 = vpop.f32.mrb[15].mxu0 }
 0x118   :  { %v308_v23 = vadd.f32 %v307_v22, %v123_v15 }
 0x119   :  { %v364_v24 = vpack.c.bf16 %v316_v21, %v313_v16  ;;  %v3225_v21 = vld [vmem:[%s3962_s0 + $0x20] sm:$0xff]  }
 0x11a   :  { %v363_v25 = vpack.c.bf16 %v308_v23, %v305_v19 }
 0x11c   :  { %2937 = vmatprep.mubr.bf16.mxu1 %v363_v25  ;;  %v3226_v25 = vld [vmem:[%s3962_s0 + $0x28] sm:$0xff]  }
 0x11d   :  { %2938 = vmatmul.mubr.bf16.gmra.mrb[12].mxu1 %v364_v24 }
 0x11e   :  { %2975 = vmatprep.mubr.bf16.mxu1 %v3219_v39 }
 0x1d8   :  { %v2927_v14 = vpop.f32.mrb[0].mxu1 }
 0x1d9   :  { %v462_v26 = vadd.f32 %v2927_v14, %v3576_v12  ;;  %v453_v27 = vpop.f32.mrb[1].mxu1 }
 0x1da   :  { %v454_v28 = vadd.f32 %v3576_v12, %v453_v27  ;;  %v2928_v29 = vpop.f32.mrb[2].mxu1 }
 0x1db   :  { %v465_v30 = vadd.f32 %v2928_v29, %v3576_v12  ;;  %v456_v31 = vpop.f32.mrb[3].mxu1  ;;  %v518_v33 = vmax.f32 %v462_v26, 0.0  ;;  %v732_v26 = vlaneseq }
 0x1dc   :  { %v457_v32 = vadd.f32 %v3576_v12, %v456_v31  ;;  %v516_v35 = vmax.f32 %v454_v28, 0.0  ;;  %v2601_v28 = vld [vmem:[%s3964_s25] ss:$0 sm:$0xff] }
 0x1dd   :  { %v519_v34 = vmax.f32 %v465_v30, 0.0  ;;  %v733_v27 = vshrl.u32 %v732_v26, 7 }
 0x1de   :  { %v517_v36 = vmax.f32 %v457_v32, 0.0 }
 0x1df   :  { %v533_v37 = vpack.c.bf16 %v519_v34, %v518_v33  ;;  %v3622_v30 = vsub.s32 0, %v733_v27 }
 0x1e0   :  { %v532_v38 = vpack.c.bf16 %v517_v36, %v516_v35  ;;  %v2931_v40 = vpop.f32.mrb[4].mxu1  ;;  %v2610_v35 = vld [vmem:[%s3965_s10] ss:$0 sm:$0xff] }
 0x1e1   :  { %v478_v41 = vadd.f32 %v2931_v40, %v3576_v12  ;;  %v469_v42 = vpop.f32.mrb[5].mxu1 }
 0x1e2   :  { %2957 = vmatprep.mubr.bf16.mxu0 %v532_v38  ;;  %v470_v44 = vadd.f32 %v3576_v12, %v469_v42  ;;  %v2932_v45 = vpop.f32.mrb[6].mxu1  ;;  %v2611_v42 = vld [vmem:[%s3927_s6] ss:$0 sm:$0xff] }
 0x1e3   :  { %2958 = vmatmul.mubr.bf16.vlgmr.msra.gmra.mrb[16].mxu0 %v533_v37  ;;  %v522_v47 = vmax.f32 %v478_v41, 0.0  ;;  %v481_v48 = vadd.f32 %v2932_v45, %v3576_v12  ;;  %v472_v49 = vpop.f32.mrb[7].mxu1 }
 0x1e4   :  { %v520_v50 = vmax.f32 %v470_v44, 0.0  ;;  %v473_v51 = vadd.f32 %v3576_v12, %v472_v49  ;;  %2992 = vmatpush3.bf16.msra.mxu0 %v3221_v43 }
 0x1e5   :  { %v523_v54 = vmax.f32 %v481_v48, 0.0  ;;  %2993 = vmatprep.subr.bf16.mxu0 %v3222_v46 }
 0x1e6   :  { %v521_v57 = vmax.f32 %v473_v51, 0.0 }
 0x1e7   :  { %v535_v60 = vpack.c.bf16 %v523_v54, %v522_v47  ;;  %v2612_v47 = vld [vmem:[%s3928_s7] ss:$0 sm:$0xff]  ;;  %v3228_v54 = vld [vmem:[%s3962_s0 + $0x38] sm:$0xff]  }
 0x1e8   :  { %v2935_v52 = vpop.f32.mrb[8].mxu1  ;;  %v534_v1 = vpack.c.bf16 %v521_v57, %v520_v50  ;;  %2994 = vmatpush3.bf16.msra.mxu0 %v3222_v46  ;;  %v3232_v57 = vld [vmem:[%s3958_s30 + $0x20] sm:$0xff]  }
 0x1e9   :  { %v494_v55 = vadd.f32 %v2935_v52, %v3576_v12  ;;  %v485_v56 = vpop.f32.mrb[9].mxu1  ;;  %2995 = vmatprep.subr.bf16.mxu0 %v3223_v53  ;;  %v3220_v52 = vld [vmem:[%s3958_s30 + $0x8] sm:$0xff]  }
 0x1ea   :  { %v486_v58 = vadd.f32 %v3576_v12, %v485_v56  ;;  %v2936_v59 = vpop.f32.mrb[10].mxu1  ;;  %2961 = vmatprep.mubr.bf16.mxu0 %v534_v1  ;;  %v3230_v56 = vld [vmem:[%s3958_s30 + $0x18] sm:$0xff]   ;;  %v3235_v1 = vld [vmem:[%s3929_s12 + $0x10] sm:$0xff]  }
 0x1eb   :  { %v526_v61 = vmax.f32 %v494_v55, 0.0  ;;  %v497_v62 = vadd.f32 %v2936_v59, %v3576_v12  ;;  %v488_v63 = vpop.f32.mrb[11].mxu1  ;;  %2962 = vmatmul.mubr.bf16.gmra.mrb[20].mxu0 %v535_v60  ;;  %v3229_v55 = vld [vmem:[%s3958_s30 + $0x10] sm:$0xff]   ;;  %v3233_v60 = vld [vmem:[%s3929_s12 + $0x8] sm:$0xff]  }
 0x1ec   :  { %v524_v2 = vmax.f32 %v486_v58, 0.0  ;;  %v489_v3 = vadd.f32 %v3576_v12, %v488_v63  ;;  %2996 = vmatpush3.bf16.msra.mxu0 %v3223_v53  ;;  %v3227_v53 = vld [vmem:[%s3962_s0 + $0x30] sm:$0xff]   ;;  %v3231_v58 = vld [vmem:[%s3929_s12] sm:$0xff]  }
 0x1ed   :  { %v527_v5 = vmax.f32 %v497_v62, 0.0  ;;  %2997 = vmatprep.subr.bf16.mxu0 %v3224_v0 }
 0x1ee   :  { %v525_v9 = vmax.f32 %v489_v3, 0.0  ;;  %v3237_v3 = vld [vmem:[%s3929_s12 + $0x18] sm:$0xff]  }
 0x1ef   :  { %v537_v13 = vpack.c.bf16 %v527_v5, %v526_v61 }
 0x1f0   :  { %v2939_v4 = vpop.f32.mrb[12].mxu1  ;;  %v536_v17 = vpack.c.bf16 %v525_v9, %v524_v2  ;;  %2998 = vmatpush3.bf16.msra.mxu0 %v3224_v0  ;;  %v3234_v0 = vld [vmem:[%s3958_s30 + $0x28] sm:$0xff]   ;;  %v3236_v2 = vld [vmem:[%s3958_s30 + $0x30] sm:$0xff]   ;;  %v3238_v9 = vld [vmem:[%s3958_s30 + $0x38] sm:$0xff]  }
 0x1f1   :  { %v510_v6 = vadd.f32 %v2939_v4, %v3576_v12  ;;  %v501_v7 = vpop.f32.mrb[13].mxu1  ;;  %2999 = vmatprep.subr.bf16.mxu0 %v3225_v21 }
 0x1f2   :  { %v502_v11 = vadd.f32 %v3576_v12, %v501_v7  ;;  %v2940_v10 = vpop.f32.mrb[14].mxu1  ;;  %2965 = vmatprep.mubr.bf16.mxu0 %v536_v17 }
 0x1f3   :  { %v530_v15 = vmax.f32 %v510_v6, 0.0  ;;  %v513_v8 = vadd.f32 %v2940_v10, %v3576_v12  ;;  %v504_v16 = vpop.f32.mrb[15].mxu1  ;;  %2966 = vmatmul.mubr.bf16.gmra.mrb[24].mxu0 %v537_v13  ;;  %v3240_v10 = vld [vmem:[%s3929_s12 + $0x28] sm:$0xff]  }
 0x1f4   :  { %v528_v18 = vmax.f32 %v502_v11, 0.0  ;;  %v505_v19 = vadd.f32 %v3576_v12, %v504_v16  ;;  %3000 = vmatpush3.bf16.msra.mxu0 %v3225_v21  ;;  %v356_v12 = vld [vmem:[%s3963_s1] sm:$0x1] }
 0x1f5   :  { %v531_v20 = vmax.f32 %v513_v8, 0.0  ;;  %3001 = vmatprep.subr.bf16.mxu0 %v3226_v25  ;;  %v707_v14 = vadd.f32 1e-05, %v356_v12  ;;  %v3239_v11 = vld [vmem:[%s3929_s12 + $0x20] sm:$0xff]   ;;  %v3242_v12 = vld [vmem:[%s3929_s12 + $0x38] sm:$0xff]  }
 0x1f6   :  { %v529_v22 = vmax.f32 %v505_v19, 0.0 }
 0x1f7   :  { %v539_v23 = vpack.c.bf16 %v531_v20, %v530_v15  ;;  %3291 = vrsqrt.f32 %v707_v14 }
 0x1f8   :  { %v538_v24 = vpack.c.bf16 %v529_v22, %v528_v18  ;;  %3002 = vmatpush3.bf16.msra.mxu0 %v3226_v25  ;;  %v3241_v25 = vld [vmem:[%s3929_s12 + $0x30] sm:$0xff]  }
 0x1f9   :  { %3003 = vmatprep.subr.bf16.mxu0 %v3227_v53 }
 0x1fa   :  { %2969 = vmatprep.mubr.bf16.mxu0 %v538_v24 }
 0x1fb   :  { %2970 = vmatmul.mubr.bf16.gmra.mrb[28].mxu0 %v539_v23 }
 0x1fc   :  { %3004 = vmatpush3.bf16.msra.mxu0 %v3227_v53 }
 0x1fd   :  { %3005 = vmatprep.subr.bf16.mxu0 %v3228_v54 }
 0x200   :  { %3006 = vmatpush3.bf16.msra.mxu0 %v3228_v54 }
 0x201   :  { %v3292_v31 = vpop.eup %3291 }
 0x202   :  { %v735_v38 = vrot.slane %v3292_v31, %v3622_v30 }
 0x2b6   :  { %v2959_v29 = vpop.f32.mrb[16].mxu0 }
 0x2b7   :  { %v628_v32 = vpop.f32.mrb[17].mxu0 }
 0x2b8   :  { %v629_v33 = vadd.f32 %v2601_v28, %v628_v32  ;;  %v2960_v34 = vpop.f32.mrb[18].mxu0 }
 0x2b9   :  { %v631_v36 = vpop.f32.mrb[19].mxu0 }
 0x2ba   :  { %v691_v37 = vmax.f32 %v629_v33, 0.0  ;;  %v632_v39 = vadd.f32 %v2601_v28, %v631_v36 }
 0x2bc   :  { %v715_v40 = vsub.f32 %v691_v37, %v2610_v35  ;;  %v692_v41 = vmax.f32 %v632_v39, 0.0 }
 0x2be   :  { %v737_v43 = vmul.f32 %v735_v38, %v715_v40  ;;  %v716_v44 = vsub.f32 %v692_v41, %v2610_v35  ;;  %v2963_v59 = vpop.f32.mrb[20].mxu0 }
 0x2bf   :  { %v644_v61 = vpop.f32.mrb[21].mxu0 }
 0x2c0   :  { %v759_v45 = vmul.f32 %v2611_v42, %v737_v43  ;;  %v738_v46 = vmul.f32 %v735_v38, %v716_v44  ;;  %v2964_v62 = vpop.f32.mrb[22].mxu0 }
 0x2c1   :  { %v647_v63 = vpop.f32.mrb[23].mxu0  ;;  %v3245_v62 = vld [vmem:[%s3962_s0 + $0x40] sm:$0xff]  }
 0x2c2   :  { %v760_v48 = vmul.f32 %v2611_v42, %v738_v46  ;;  %v781_v49 = vadd.f32 %v2612_v47, %v759_v45  ;;  %v3688_v45 = vld [vmem:[%s3930_s11] ss:$0 sm:$0xff]  ;;  %v3246_v63 = vld [vmem:[%s3962_s0 + $0x48] sm:$0xff]  }
 0x2c4   :  { %v782_v50 = vadd.f32 %v2612_v47, %v760_v48 }
 0x2c6   :  { %v894_v51 = vpack.c.bf16 %v782_v50, %v781_v49  ;;  %v2967_v4 = vpop.f32.mrb[24].mxu0 }
 0x2c7   :  { %v660_v5 = vpop.f32.mrb[25].mxu0 }
 0x2c8   :  { %2973 = vmatprep.subr.bf16.mxu1 %v894_v51  ;;  %v2968_v6 = vpop.f32.mrb[26].mxu0 }
 0x2c9   :  { %2974 = vmatpush3.bf16.msra.mxu1 %v894_v51  ;;  %v663_v7 = vpop.f32.mrb[27].mxu0 }
 0x2ca   :  { %3023 = vmatprep.subr.bf16.mxu1 %v3231_v58 }
 0x2cc   :  { %2976 = vmatmul.mubr.bf16.vlgmr.msra.gmra.mrb[16].mxu1 %v3220_v52 }
 0x2cd   :  { %2979 = vmatprep.mubr.bf16.mxu1 %v3229_v55  ;;  %3024 = vmatpush3.bf16.msra.mxu1 %v3231_v58 }
 0x2ce   :  { %3025 = vmatprep.subr.bf16.mxu1 %v3233_v60  ;;  %v2971_v13 = vpop.f32.mrb[28].mxu0 }
 0x2cf   :  { %v676_v15 = vpop.f32.mrb[29].mxu0 }
 0x2d0   :  { %v2972_v8 = vpop.f32.mrb[30].mxu0 }
 0x2d1   :  { %3026 = vmatpush3.bf16.msra.mxu1 %v3233_v60  ;;  %v679_v16 = vpop.f32.mrb[31].mxu0  ;;  %v3243_v60 = vld [vmem:[%s3958_s30] sm:$0xff]  }
 0x2d2   :  { %3027 = vmatprep.subr.bf16.mxu1 %v3235_v1 }
 0x2d4   :  { %2980 = vmatmul.mubr.bf16.gmra.mrb[20].mxu1 %v3230_v56 }
 0x2d5   :  { %2983 = vmatprep.mubr.bf16.mxu1 %v3232_v57  ;;  %3028 = vmatpush3.bf16.msra.mxu1 %v3235_v1 }
 0x2d6   :  { %3029 = vmatprep.subr.bf16.mxu1 %v3237_v3 }
 0x2d9   :  { %3030 = vmatpush3.bf16.msra.mxu1 %v3237_v3 }
 0x2da   :  { %3031 = vmatprep.subr.bf16.mxu1 %v3239_v11 }
 0x2dc   :  { %2984 = vmatmul.mubr.bf16.gmra.mrb[24].mxu1 %v3234_v0 }
 0x2dd   :  { %2987 = vmatprep.mubr.bf16.mxu1 %v3236_v2  ;;  %3032 = vmatpush3.bf16.msra.mxu1 %v3239_v11 }
 0x2de   :  { %3033 = vmatprep.subr.bf16.mxu1 %v3240_v10 }
 0x2e1   :  { %3034 = vmatpush3.bf16.msra.mxu1 %v3240_v10  ;;  %v3247_v10 = vld [vmem:[%s3962_s0 + $0x50] sm:$0xff]  }
 0x2e2   :  { %3035 = vmatprep.subr.bf16.mxu1 %v3241_v25 }
 0x2e4   :  { %2988 = vmatmul.mubr.bf16.gmra.mrb[28].mxu1 %v3238_v9 }
 0x2e5   :  { %3036 = vmatpush3.bf16.msra.mxu1 %v3241_v25 }
 0x2e6   :  { %3037 = vmatprep.subr.bf16.mxu1 %v3242_v12 }
 0x2e9   :  { %3038 = vmatpush3.bf16.msra.mxu1 %v3242_v12 }
 0x2ea   :  { %3073 = vmatprep.subr.bf16.mxu1 %v3245_v62 }
 0x39f   :  { %v2977_v17 = vpop.f32.mrb[16].mxu1 }
 0x3a0   :  { %v984_v18 = vpop.f32.mrb[17].mxu1 }
 0x3a1   :  { %v2978_v19 = vpop.f32.mrb[18].mxu1  ;;  %v985_v22 = vadd.f32 %v984_v18, %v781_v49 }
 0x3a2   :  { %v1086_v20 = vpack.c.bf16 %v2978_v19, %v2977_v17  ;;  %v987_v21 = vpop.f32.mrb[19].mxu1 }
 0x3a3   :  { %v988_v23 = vadd.f32 %v987_v21, %v782_v50 }
 0x3a5   :  { %v1085_v24 = vpack.c.bf16 %v988_v23, %v985_v22 }
 0x3a7   :  { %3007 = vmatprep.mubr.bf16.mxu0 %v1085_v24  ;;  %v2981_v14 = vpop.f32.mrb[20].mxu1 }
 0x3a8   :  { %3008 = vmatmul.mubr.bf16.vlgmr.msra.gmra.mrb[32].mxu0 %v1086_v20  ;;  %v1000_v27 = vpop.f32.mrb[21].mxu1 }
 0x3a9   :  { %v2982_v28 = vpop.f32.mrb[22].mxu1 }
 0x3aa   :  { %v1088_v29 = vpack.c.bf16 %v2982_v28, %v2981_v14  ;;  %v1003_v31 = vpop.f32.mrb[23].mxu1 }
 0x3ab   :  { %v1087_v32 = vpack.c.bf16 %v1003_v31, %v1000_v27 }
 0x3ad   :  { %3011 = vmatprep.mubr.bf16.mxu0 %v1087_v32 }
 0x3af   :  { %v2985_v33 = vpop.f32.mrb[24].mxu1 }
 0x3b0   :  { %v1016_v34 = vpop.f32.mrb[25].mxu1  ;;  %3012 = vmatmul.mubr.bf16.gmra.mrb[36].mxu0 %v1088_v29  ;;  %v3248_v29 = vld [vmem:[%s3962_s0 + $0x58] sm:$0xff]  }
 0x3b1   :  { %v2986_v35 = vpop.f32.mrb[26].mxu1 }
 0x3b2   :  { %v1090_v36 = vpack.c.bf16 %v2986_v35, %v2985_v33  ;;  %v1019_v37 = vpop.f32.mrb[27].mxu1 }
 0x3b3   :  { %v1089_v38 = vpack.c.bf16 %v1019_v37, %v1016_v34 }
 0x3b5   :  { %3015 = vmatprep.mubr.bf16.mxu0 %v1089_v38 }
 0x3b7   :  { %v2989_v39 = vpop.f32.mrb[28].mxu1 }
 0x3b8   :  { %v1032_v40 = vpop.f32.mrb[29].mxu1  ;;  %3016 = vmatmul.mubr.bf16.gmra.mrb[40].mxu0 %v1090_v36 }
 0x3b9   :  { %v2990_v41 = vpop.f32.mrb[30].mxu1 }
 0x3ba   :  { %v1092_v42 = vpack.c.bf16 %v2990_v41, %v2989_v39  ;;  %v1035_v43 = vpop.f32.mrb[31].mxu1 }
 0x3bb   :  { %v1091_v44 = vpack.c.bf16 %v1035_v43, %v1032_v40 }
 0x3bd   :  { %3019 = vmatprep.mubr.bf16.mxu0 %v1091_v44 }
 0x3c0   :  { %3020 = vmatmul.mubr.bf16.gmra.mrb[44].mxu0 %v1092_v42  ;;  %v3249_v42 = vld [vmem:[%s3962_s0 + $0x60] sm:$0xff]  }
 0x3c1   :  { %3057 = vmatprep.mubr.bf16.mxu0 %v3243_v60 }
 0x47b   :  { %v3009_v46 = vpop.f32.mrb[32].mxu0 }
 0x47c   :  { %v1190_v47 = vadd.f32 %v3009_v46, %v3688_v45  ;;  %v1181_v48 = vpop.f32.mrb[33].mxu0 }
 0x47d   :  { %v1182_v49 = vadd.f32 %v3688_v45, %v1181_v48  ;;  %v3010_v50 = vpop.f32.mrb[34].mxu0 }
 0x47e   :  { %v1193_v51 = vadd.f32 %v3010_v50, %v3688_v45  ;;  %v1184_v52 = vpop.f32.mrb[35].mxu0  ;;  %v1246_v54 = vmax.f32 %v1190_v47, 0.0  ;;  %v3250_v47 = vld [vmem:[%s3962_s0 + $0x68] sm:$0xff]  }
 0x47f   :  { %v1185_v53 = vadd.f32 %v3688_v45, %v1184_v52  ;;  %v1244_v56 = vmax.f32 %v1182_v49, 0.0  ;;  %v2630_v49 = vld [vmem:[%s3932_s13] ss:$0 sm:$0xff] }
 0x480   :  { %v1247_v55 = vmax.f32 %v1193_v51, 0.0 }
 0x481   :  { %v1245_v57 = vmax.f32 %v1185_v53, 0.0 }
 0x482   :  { %v1261_v58 = vpack.c.bf16 %v1247_v55, %v1246_v54  ;;  %v2639_v55 = vld [vmem:[%s3933_s16] ss:$0 sm:$0xff] }
 0x483   :  { %v1260_v59 = vpack.c.bf16 %v1245_v57, %v1244_v56  ;;  %v3013_v61 = vpop.f32.mrb[36].mxu0 }
 0x484   :  { %v1206_v0 = vadd.f32 %v3013_v61, %v3688_v45  ;;  %v1197_v1 = vpop.f32.mrb[37].mxu0 }
 0x485   :  { %3039 = vmatprep.mubr.bf16.mxu1 %v1260_v59  ;;  %v1198_v2 = vadd.f32 %v3688_v45, %v1197_v1  ;;  %v3014_v3 = vpop.f32.mrb[38].mxu0 }
 0x486   :  { %3040 = vmatmul.mubr.bf16.vlgmr.msra.gmra.mrb[32].mxu1 %v1261_v58  ;;  %v1250_v4 = vmax.f32 %v1206_v0, 0.0  ;;  %v1209_v5 = vadd.f32 %v3014_v3, %v3688_v45  ;;  %v1200_v6 = vpop.f32.mrb[39].mxu0  ;;  %v2641_v3 = vld [vmem:[%s3935_s15] ss:$0 sm:$0xff] }
 0x487   :  { %3074 = vmatpush3.bf16.msra.mxu1 %v3245_v62  ;;  %v1248_v7 = vmax.f32 %v1198_v2, 0.0  ;;  %v1201_v9 = vadd.f32 %v3688_v45, %v1200_v6  ;;  %v2640_v62 = vld [vmem:[%s3934_s14] ss:$0 sm:$0xff] }
 0x488   :  { %3075 = vmatprep.subr.bf16.mxu1 %v3246_v63  ;;  %v1251_v13 = vmax.f32 %v1209_v5, 0.0 }
 0x489   :  { %v1249_v16 = vmax.f32 %v1201_v9, 0.0  ;;  %v3244_v9 = vld [vmem:[%s3958_s30 + $0x8] sm:$0xff]  }
 0x48a   :  { %v1263_v19 = vpack.c.bf16 %v1251_v13, %v1250_v4  ;;  %v3253_v13 = vld [vmem:[%s3958_s30 + $0x10] sm:$0xff]  }
 0x48b   :  { %v3017_v11 = vpop.f32.mrb[40].mxu0  ;;  %3076 = vmatpush3.bf16.msra.mxu1 %v3246_v63  ;;  %v1262_v23 = vpack.c.bf16 %v1249_v16, %v1248_v7  ;;  %v3256_v16 = vld [vmem:[%s3958_s30 + $0x20] sm:$0xff]  }
 0x48c   :  { %v1222_v15 = vadd.f32 %v3017_v11, %v3688_v45  ;;  %v1213_v8 = vpop.f32.mrb[41].mxu0  ;;  %3077 = vmatprep.subr.bf16.mxu1 %v3247_v10  ;;  %v3251_v11 = vld [vmem:[%s3962_s0 + $0x70] sm:$0xff]  }
 0x48d   :  { %v1214_v17 = vadd.f32 %v3688_v45, %v1213_v8  ;;  %v3018_v18 = vpop.f32.mrb[42].mxu0  ;;  %3043 = vmatprep.mubr.bf16.mxu1 %v1262_v23  ;;  %v3255_v8 = vld [vmem:[%s3929_s12 + $0x40] sm:$0xff]   ;;  %v3258_v23 = vld [vmem:[%s3958_s30 + $0x28] sm:$0xff]  }
 0x48e   :  { %v1254_v20 = vmax.f32 %v1222_v15, 0.0  ;;  %v1225_v21 = vadd.f32 %v3018_v18, %v3688_v45  ;;  %v1216_v22 = vpop.f32.mrb[43].mxu0  ;;  %3044 = vmatmul.mubr.bf16.gmra.mrb[36].mxu1 %v1263_v19  ;;  %v3254_v15 = vld [vmem:[%s3958_s30 + $0x18] sm:$0xff]  }
 0x48f   :  { %v1252_v24 = vmax.f32 %v1214_v17, 0.0  ;;  %v1217_v25 = vadd.f32 %v3688_v45, %v1216_v22  ;;  %3078 = vmatpush3.bf16.msra.mxu1 %v3247_v10  ;;  %v3252_v10 = vld [vmem:[%s3962_s0 + $0x78] sm:$0xff]   ;;  %v3257_v17 = vld [vmem:[%s3929_s12 + $0x48] sm:$0xff]   ;;  %v3259_v22 = vld [vmem:[%s3929_s12 + $0x50] sm:$0xff]  }
 0x490   :  { %v1255_v14 = vmax.f32 %v1225_v21, 0.0  ;;  %3079 = vmatprep.subr.bf16.mxu1 %v3248_v29 }
 0x491   :  { %v1253_v31 = vmax.f32 %v1217_v25, 0.0  ;;  %v3261_v25 = vld [vmem:[%s3929_s12 + $0x58] sm:$0xff]  }
 0x492   :  { %v1265_v34 = vpack.c.bf16 %v1255_v14, %v1254_v20 }
 0x493   :  { %v3021_v12 = vpop.f32.mrb[44].mxu0  ;;  %v1264_v38 = vpack.c.bf16 %v1253_v31, %v1252_v24  ;;  %3080 = vmatpush3.bf16.msra.mxu1 %v3248_v29  ;;  %v3260_v24 = vld [vmem:[%s3958_s30 + $0x30] sm:$0xff]   ;;  %v3263_v29 = vld [vmem:[%s3929_s12 + $0x60] sm:$0xff]   ;;  %v3262_v31 = vld [vmem:[%s3958_s30 + $0x38] sm:$0xff]  }
 0x494   :  { %v1238_v27 = vadd.f32 %v3021_v12, %v3688_v45  ;;  %v1229_v28 = vpop.f32.mrb[45].mxu0  ;;  %3081 = vmatprep.subr.bf16.mxu1 %v3249_v42 }
 0x495   :  { %v1230_v32 = vadd.f32 %v3688_v45, %v1229_v28  ;;  %v3022_v33 = vpop.f32.mrb[46].mxu0  ;;  %3047 = vmatprep.mubr.bf16.mxu1 %v1264_v38 }
 0x496   :  { %v1258_v35 = vmax.f32 %v1238_v27, 0.0  ;;  %v1241_v36 = vadd.f32 %v3022_v33, %v3688_v45  ;;  %v1232_v37 = vpop.f32.mrb[47].mxu0  ;;  %3048 = vmatmul.mubr.bf16.gmra.mrb[40].mxu1 %v1265_v34 }
 0x497   :  { %v1256_v39 = vmax.f32 %v1230_v32, 0.0  ;;  %v1233_v40 = vadd.f32 %v3688_v45, %v1232_v37  ;;  %3082 = vmatpush3.bf16.msra.mxu1 %v3249_v42  ;;  %v1084_v45 = vld [vmem:[%s3931_s17] sm:$0x1]  ;;  %v3264_v32 = vld [vmem:[%s3929_s12 + $0x68] sm:$0xff]  }
 0x498   :  { %v1259_v41 = vmax.f32 %v1241_v36, 0.0  ;;  %3083 = vmatprep.subr.bf16.mxu1 %v3250_v47  ;;  %v1435_v48 = vadd.f32 1e-05, %v1084_v45 }
 0x499   :  { %v1257_v43 = vmax.f32 %v1233_v40, 0.0 }
 0x49a   :  { %v1267_v44 = vpack.c.bf16 %v1259_v41, %v1258_v35  ;;  %3293 = vrsqrt.f32 %v1435_v48 }
 0x49b   :  { %v1266_v46 = vpack.c.bf16 %v1257_v43, %v1256_v39  ;;  %3084 = vmatpush3.bf16.msra.mxu1 %v3250_v47  ;;  %v3266_v47 = vld [vmem:[%s3929_s12 + $0x78] sm:$0xff]  }
 0x49c   :  { %3085 = vmatprep.subr.bf16.mxu1 %v3251_v11 }
 0x49d   :  { %3051 = vmatprep.mubr.bf16.mxu1 %v1266_v46  ;;  %v3265_v46 = vld [vmem:[%s3929_s12 + $0x70] sm:$0xff]  }
 0x49e   :  { %3052 = vmatmul.mubr.bf16.gmra.mrb[44].mxu1 %v1267_v44 }
 0x49f   :  { %3086 = vmatpush3.bf16.msra.mxu1 %v3251_v11 }
 0x4a0   :  { %3087 = vmatprep.subr.bf16.mxu1 %v3252_v10 }
 0x4a3   :  { %3088 = vmatpush3.bf16.msra.mxu1 %v3252_v10 }
 0x4a4   :  { %v3294_v51 = vpop.eup %3293 }
 0x4a5   :  { %v1463_v58 = vrot.slane %v3294_v51, %v3622_v30 }
 0x559   :  { %v3041_v50 = vpop.f32.mrb[32].mxu1 }
 0x55a   :  { %v1356_v52 = vpop.f32.mrb[33].mxu1 }
 0x55b   :  { %v1357_v53 = vadd.f32 %v2630_v49, %v1356_v52  ;;  %v3042_v54 = vpop.f32.mrb[34].mxu1 }
 0x55c   :  { %v1359_v56 = vpop.f32.mrb[35].mxu1 }
 0x55d   :  { %v1419_v57 = vmax.f32 %v1357_v53, 0.0  ;;  %v1360_v59 = vadd.f32 %v2630_v49, %v1359_v56 }
 0x55f   :  { %v1443_v60 = vsub.f32 %v1419_v57, %v2639_v55  ;;  %v1420_v61 = vmax.f32 %v1360_v59, 0.0 }
 0x561   :  { %v1465_v63 = vmul.f32 %v1463_v58, %v1443_v60  ;;  %v1444_v0 = vsub.f32 %v1420_v61, %v2639_v55  ;;  %v3045_v18 = vpop.f32.mrb[36].mxu1 }
 0x562   :  { %v1372_v19 = vpop.f32.mrb[37].mxu1  ;;  %v3301_v18 = vmov 0.0  }
 0x563   :  { %v1487_v1 = vmul.f32 %v2640_v62, %v1465_v63  ;;  %v1466_v2 = vmul.f32 %v1463_v58, %v1444_v0  ;;  %v3046_v20 = vpop.f32.mrb[38].mxu1  ;;  %3137 = vmatprep.subr.bf16.mxu1 %v3301_v18 }
 0x564   :  { %v1375_v21 = vpop.f32.mrb[39].mxu1  ;;  %v3303_v20 = vmov 0  }
 0x565   :  { %v1488_v4 = vmul.f32 %v2640_v62, %v1466_v2  ;;  %v1509_v5 = vadd.f32 %v2641_v3, %v1487_v1  ;;  %v3797_v1 = vld [vmem:[%s3930_s11 + $0x1] ss:$0 sm:$0xff]  ;;  %3186 = vset.pattern.permute.xlu0 %v3303_v20 }
 0x566   :  { %v2325_v21 = vld [vmem:[%s3936_s19] sm:$0xff] }
 0x567   :  { %v1510_v6 = vadd.f32 %v2641_v3, %v1488_v4  ;;  %2328 = vperm.xlu0 %3186, %v2325_v21  }
 0x569   :  { %v1589_v7 = vpack.c.bf16 %v1510_v6, %v1509_v5  ;;  %v3049_v12 = vpop.f32.mrb[40].mxu1 }
 0x56a   :  { %v1388_v14 = vpop.f32.mrb[41].mxu1  ;;  %v3267_v12 = vld [vmem:[%s3937_s20] sm:$0xff]  }
 0x56b   :  { %3055 = vmatprep.subr.bf16.mxu0 %v1589_v7  ;;  %v3050_v27 = vpop.f32.mrb[42].mxu1 }
 0x56c   :  { %3056 = vmatpush3.bf16.msra.mxu0 %v1589_v7  ;;  %v1391_v28 = vpop.f32.mrb[43].mxu1 }
 0x56d   :  { %3105 = vmatprep.subr.bf16.mxu0 %v3255_v8 }
 0x56f   :  { %3058 = vmatmul.mubr.bf16.vlgmr.msra.gmra.mrb[48].mxu0 %v3244_v9 }
 0x570   :  { %3061 = vmatprep.mubr.bf16.mxu0 %v3253_v13  ;;  %3106 = vmatpush3.bf16.msra.mxu0 %v3255_v8 }
 0x571   :  { %3107 = vmatprep.subr.bf16.mxu0 %v3257_v17  ;;  %v3053_v33 = vpop.f32.mrb[44].mxu1 }
 0x572   :  { %v1404_v34 = vpop.f32.mrb[45].mxu1 }
 0x573   :  { %v3054_v35 = vpop.f32.mrb[46].mxu1 }
 0x574   :  { %3108 = vmatpush3.bf16.msra.mxu0 %v3257_v17  ;;  %v1407_v36 = vpop.f32.mrb[47].mxu1 }
 0x575   :  { %3109 = vmatprep.subr.bf16.mxu0 %v3259_v22 }
 0x577   :  { %3062 = vmatmul.mubr.bf16.gmra.mrb[52].mxu0 %v3254_v15 }
 0x578   :  { %3065 = vmatprep.mubr.bf16.mxu0 %v3256_v16  ;;  %3110 = vmatpush3.bf16.msra.mxu0 %v3259_v22 }
 0x579   :  { %3111 = vmatprep.subr.bf16.mxu0 %v3261_v25 }
 0x57c   :  { %3112 = vmatpush3.bf16.msra.mxu0 %v3261_v25 }
 0x57d   :  { %3113 = vmatprep.subr.bf16.mxu0 %v3263_v29 }
 0x57f   :  { %3066 = vmatmul.mubr.bf16.gmra.mrb[56].mxu0 %v3258_v23 }
 0x580   :  { %3069 = vmatprep.mubr.bf16.mxu0 %v3260_v24  ;;  %3114 = vmatpush3.bf16.msra.mxu0 %v3263_v29  ;;  %v3268_v29 = vld [vmem:[%s3937_s20 + $0x8] sm:$0xff]  }
 0x581   :  { %3115 = vmatprep.subr.bf16.mxu0 %v3264_v32 }
 0x584   :  { %3116 = vmatpush3.bf16.msra.mxu0 %v3264_v32 }
 0x585   :  { %3117 = vmatprep.subr.bf16.mxu0 %v3265_v46 }
 0x587   :  { %3070 = vmatmul.mubr.bf16.gmra.mrb[60].mxu0 %v3262_v31 }
 0x588   :  { %3118 = vmatpush3.bf16.msra.mxu0 %v3265_v46 }
 0x589   :  { %3119 = vmatprep.subr.bf16.mxu0 %v3266_v47 }
 0x58c   :  { %3120 = vmatpush3.bf16.msra.mxu0 %v3266_v47 }
 0x58d   :  { %3143 = vmatprep.subr.bf16.mxu0 %v3301_v18 }
 0x642   :  { %v3059_v37 = vpop.f32.mrb[48].mxu0 }
 0x643   :  { %v1679_v38 = vpop.f32.mrb[49].mxu0 }
 0x644   :  { %v3060_v39 = vpop.f32.mrb[50].mxu0  ;;  %v1680_v42 = vadd.f32 %v1679_v38, %v1509_v5 }
 0x645   :  { %v1789_v40 = vpack.c.bf16 %v3060_v39, %v3059_v37  ;;  %v1682_v41 = vpop.f32.mrb[51].mxu0 }
 0x646   :  { %v1683_v43 = vadd.f32 %v1682_v41, %v1510_v6 }
 0x648   :  { %v1788_v44 = vpack.c.bf16 %v1683_v43, %v1680_v42 }
 0x64a   :  { %3089 = vmatprep.mubr.bf16.mxu1 %v1788_v44  ;;  %v3063_v45 = vpop.f32.mrb[52].mxu0 }
 0x64b   :  { %3090 = vmatmul.mubr.bf16.vlgmr.msra.gmra.mrb[48].mxu1 %v1789_v40  ;;  %v1695_v48 = vpop.f32.mrb[53].mxu0 }
 0x64c   :  { %v3064_v49 = vpop.f32.mrb[54].mxu0 }
 0x64d   :  { %v1791_v50 = vpack.c.bf16 %v3064_v49, %v3063_v45  ;;  %v1698_v51 = vpop.f32.mrb[55].mxu0 }
 0x64e   :  { %v1790_v52 = vpack.c.bf16 %v1698_v51, %v1695_v48  ;;  %v3269_v48 = vld [vmem:[%s3937_s20 + $0x10] sm:$0xff]  }
 0x650   :  { %3093 = vmatprep.mubr.bf16.mxu1 %v1790_v52 }
 0x652   :  { %v3067_v53 = vpop.f32.mrb[56].mxu0 }
 0x653   :  { %v1711_v54 = vpop.f32.mrb[57].mxu0  ;;  %3094 = vmatmul.mubr.bf16.gmra.mrb[52].mxu1 %v1791_v50 }
 0x654   :  { %v3068_v55 = vpop.f32.mrb[58].mxu0 }
 0x655   :  { %v1793_v56 = vpack.c.bf16 %v3068_v55, %v3067_v53  ;;  %v1714_v57 = vpop.f32.mrb[59].mxu0 }
 0x656   :  { %v1792_v58 = vpack.c.bf16 %v1714_v57, %v1711_v54 }
 0x658   :  { %3097 = vmatprep.mubr.bf16.mxu1 %v1792_v58 }
 0x65a   :  { %v3071_v59 = vpop.f32.mrb[60].mxu0 }
 0x65b   :  { %v1727_v60 = vpop.f32.mrb[61].mxu0  ;;  %3098 = vmatmul.mubr.bf16.gmra.mrb[56].mxu1 %v1793_v56 }
 0x65c   :  { %v3072_v61 = vpop.f32.mrb[62].mxu0 }
 0x65d   :  { %v1795_v62 = vpack.c.bf16 %v3072_v61, %v3071_v59  ;;  %v1730_v63 = vpop.f32.mrb[63].mxu0 }
 0x65e   :  { %v1794_v0 = vpack.c.bf16 %v1730_v63, %v1727_v60 }
 0x660   :  { %3101 = vmatprep.mubr.bf16.mxu1 %v1794_v0 }
 0x663   :  { %3102 = vmatmul.mubr.bf16.gmra.mrb[60].mxu1 %v1795_v62  ;;  %v3270_v62 = vld [vmem:[%s3937_s20 + $0x18] sm:$0xff]  }
 0x664   :  { %3139 = vmatprep.mubr.msk.bf16.mxu1 %vm3302_vm0, %v3301_v18 }
 0x71e   :  { %v3091_v2 = vpop.f32.mrb[48].mxu1 }
 0x71f   :  { %v1893_v3 = vadd.f32 %v3091_v2, %v3797_v1  ;;  %v1884_v4 = vpop.f32.mrb[49].mxu1 }
 0x720   :  { %v1885_v5 = vadd.f32 %v3797_v1, %v1884_v4  ;;  %v3092_v6 = vpop.f32.mrb[50].mxu1  ;;  %v3271_v4 = vld [vmem:[%s3937_s20 + $0x20] sm:$0xff]  }
 0x721   :  { %v1896_v7 = vadd.f32 %v3092_v6, %v3797_v1  ;;  %v1887_v9 = vpop.f32.mrb[51].mxu1  ;;  %v1949_v10 = vmax.f32 %v1893_v3, 0.0  ;;  %v2687_v6 = vld [vmem:[%s3931_s17 + $0x1] sm:$0x1] }
 0x722   :  { %v1888_v11 = vadd.f32 %v3797_v1, %v1887_v9  ;;  %v1947_v15 = vmax.f32 %v1885_v5, 0.0  ;;  %v3273_v5 = vld [vmem:[%s3937_s20 + $0x30] sm:$0xff]   ;;  %v2697_v9 = vld [vmem:[%s3932_s13 + $0x1] ss:$0 sm:$0xff] }
 0x723   :  { %v1950_v13 = vmax.f32 %v1896_v7, 0.0  ;;  %v2138_v7 = vadd.f32 1e-05, %v2687_v6  ;;  %v2558_v6 = vand.u32 127, %v732_v26 }
 0x724   :  { %v1948_v8 = vmax.f32 %v1888_v11, 0.0 }
 0x725   :  { %v1964_v16 = vpack.c.bf16 %v1950_v13, %v1949_v10  ;;  %3295 = vrsqrt.f32 %v2138_v7  ;;  %vm2559_vm1 = vcmp.lt.s32.totalorder %v2558_v6, 4 }
 0x726   :  { %v1963_v17 = vpack.c.bf16 %v1948_v8, %v1947_v15  ;;  %v3095_v19 = vpop.f32.mrb[52].mxu1 }
 0x727   :  { %v1909_v22 = vadd.f32 %v3095_v19, %v3797_v1  ;;  %v1900_v23 = vpop.f32.mrb[53].mxu1 }
 0x728   :  { %3121 = vmatprep.mubr.bf16.mxu0 %v1963_v17  ;;  %v1901_v24 = vadd.f32 %v3797_v1, %v1900_v23  ;;  %v3096_v25 = vpop.f32.mrb[54].mxu1 }
 0x729   :  { %3122 = vmatmul.mubr.bf16.vlgmr.msra.gmra.mrb[64].mxu0 %v1964_v16  ;;  %v1953_v14 = vmax.f32 %v1909_v22, 0.0  ;;  %v1912_v27 = vadd.f32 %v3096_v25, %v3797_v1  ;;  %v1903_v28 = vpop.f32.mrb[55].mxu1  ;;  %v2706_v16 = vld [vmem:[%s3933_s16 + $0x1] ss:$0 sm:$0xff] }
 0x72a   :  { %v1951_v31 = vmax.f32 %v1901_v24, 0.0  ;;  %v1904_v32 = vadd.f32 %v3797_v1, %v1903_v28  ;;  %3144 = vmatpush3.bf16.msra.mxu0 %v3267_v12  ;;  %v2707_v24 = vld [vmem:[%s3934_s14 + $0x1] ss:$0 sm:$0xff] }
 0x72b   :  { %v1954_v34 = vmax.f32 %v1912_v27, 0.0  ;;  %3145 = vmatprep.subr.bf16.mxu0 %v3301_v18 }
 0x72c   :  { %v1952_v37 = vmax.f32 %v1904_v32, 0.0 }
 0x72d   :  { %v1966_v40 = vpack.c.bf16 %v1954_v34, %v1953_v14  ;;  %v2708_v14 = vld [vmem:[%s3935_s15 + $0x1] ss:$0 sm:$0xff]  ;;  %v3274_v34 = vld [vmem:[%s3937_s20 + $0x38] sm:$0xff]  }
 0x72e   :  { %v3099_v33 = vpop.f32.mrb[56].mxu1  ;;  %v1965_v44 = vpack.c.bf16 %v1952_v37, %v1951_v31  ;;  %3146 = vmatpush3.bf16.msra.mxu0 %v3268_v29 }
 0x72f   :  { %v1925_v35 = vadd.f32 %v3099_v33, %v3797_v1  ;;  %v1916_v36 = vpop.f32.mrb[57].mxu1  ;;  %3147 = vmatprep.subr.bf16.mxu0 %v3301_v18  ;;  %v3296_v10 = vpop.eup %3295 }
 0x730   :  { %v1917_v38 = vadd.f32 %v3797_v1, %v1916_v36  ;;  %v3100_v39 = vpop.f32.mrb[58].mxu1  ;;  %3125 = vmatprep.mubr.bf16.mxu0 %v1965_v44  ;;  %v2166_v20 = vrot.slane %v3296_v10, %v3622_v30  ;;  %v2284_v30 = vld [vmem:[%s3938_s18] sm:$0xf]  ;;  %v3276_v36 = vld [vmem:[%s3939_s22 + $0x8] sm:$0xff]  }
 0x731   :  { %v1957_v41 = vmax.f32 %v1925_v35, 0.0  ;;  %v1928_v42 = vadd.f32 %v3100_v39, %v3797_v1  ;;  %v1919_v43 = vpop.f32.mrb[59].mxu1  ;;  %3126 = vmatmul.mubr.bf16.gmra.mrb[68].mxu0 %v1966_v40  ;;  %v3275_v35 = vld [vmem:[%s3939_s22] sm:$0xff]   ;;  %v3277_v39 = vld [vmem:[%s3939_s22 + $0x10] sm:$0xff]  }
 0x732   :  { %v1955_v46 = vmax.f32 %v1917_v38, 0.0  ;;  %v1920_v47 = vadd.f32 %v3797_v1, %v1919_v43  ;;  %3148 = vmatpush3.bf16.msra.mxu0 %v3269_v48  ;;  %v3280_v48 = vld [vmem:[%s3939_s22 + $0x28] sm:$0xff]  }
 0x733   :  { %v1958_v49 = vmax.f32 %v1928_v42, 0.0  ;;  %3149 = vmatprep.subr.bf16.mxu0 %v3301_v18  ;;  %v3278_v42 = vld [vmem:[%s3939_s22 + $0x18] sm:$0xff]  }
 0x734   :  { %v1956_v52 = vmax.f32 %v1920_v47, 0.0 }
 0x735   :  { %v1968_v55 = vpack.c.bf16 %v1958_v49, %v1957_v41 }
 0x736   :  { %v3103_v45 = vpop.f32.mrb[60].mxu1  ;;  %v1967_v59 = vpack.c.bf16 %v1956_v52, %v1955_v46  ;;  %3150 = vmatpush3.bf16.msra.mxu0 %v3270_v62  ;;  %v3279_v46 = vld [vmem:[%s3939_s22 + $0x20] sm:$0xff]  }
 0x737   :  { %v1941_v50 = vadd.f32 %v3103_v45, %v3797_v1  ;;  %v1932_v51 = vpop.f32.mrb[61].mxu1  ;;  %3151 = vmatprep.subr.bf16.mxu0 %v3301_v18  ;;  %v2709_v62 = vld [vmem:[%s3940_s21] ss:$0 sm:$0xff] }
 0x738   :  { %v1933_v53 = vadd.f32 %v3797_v1, %v1932_v51  ;;  %v3104_v54 = vpop.f32.mrb[62].mxu1  ;;  %3129 = vmatprep.mubr.bf16.mxu0 %v1967_v59 }
 0x739   :  { %v1961_v56 = vmax.f32 %v1941_v50, 0.0  ;;  %v1944_v57 = vadd.f32 %v3104_v54, %v3797_v1  ;;  %v1935_v58 = vpop.f32.mrb[63].mxu1  ;;  %3130 = vmatmul.mubr.bf16.gmra.mrb[72].mxu0 %v1968_v55 }
 0x73a   :  { %v1959_v60 = vmax.f32 %v1933_v53, 0.0  ;;  %v1936_v61 = vadd.f32 %v3797_v1, %v1935_v58  ;;  %3152 = vmatpush3.bf16.msra.mxu0 %v3271_v4  ;;  %v3272_v1 = vld [vmem:[%s3937_s20 + $0x28] sm:$0xff]   ;;  %v2329_v53 = vpop.permute.xlu0 %2328 }
 0x73b   :  { %v1962_v63 = vmax.f32 %v1944_v57, 0.0  ;;  %3153 = vmatprep.subr.bf16.mxu0 %v3301_v18 }
 0x73c   :  { %v1960_v0 = vmax.f32 %v1936_v61, 0.0  ;;  %v3282_v61 = vld [vmem:[%s3939_s22 + $0x38] sm:$0xff]  }
 0x73d   :  { %v1970_v2 = vpack.c.bf16 %v1962_v63, %v1961_v56 }
 0x73e   :  { %v1969_v3 = vpack.c.bf16 %v1960_v0, %v1959_v60  ;;  %3154 = vmatpush3.bf16.msra.mxu0 %v3272_v1  ;;  %v3281_v60 = vld [vmem:[%s3939_s22 + $0x30] sm:$0xff]  }
 0x73f   :  { %3155 = vmatprep.subr.bf16.mxu0 %v3301_v18 }
 0x740   :  { %3133 = vmatprep.mubr.bf16.mxu0 %v1969_v3 }
 0x741   :  { %3134 = vmatmul.mubr.bf16.gmra.mrb[76].mxu0 %v1970_v2 }
 0x742   :  { %3156 = vmatpush3.bf16.msra.mxu0 %v3273_v5  ;;  %3159 = vmatprep.mubr.msk.bf16.mxu0 %vm3302_vm0, %v3301_v18 }
 0x743   :  { %3157 = vmatprep.subr.bf16.mxu0 %v3301_v18 }
 0x746   :  { %3158 = vmatpush3.bf16.msra.mxu0 %v3274_v34 }
 0x7fc   :  { %v3123_v11 = vpop.f32.mrb[64].mxu0 }
 0x7fd   :  { %v2059_v13 = vpop.f32.mrb[65].mxu0 }
 0x7fe   :  { %v2060_v15 = vadd.f32 %v2697_v9, %v2059_v13  ;;  %v3124_v8 = vpop.f32.mrb[66].mxu0 }
 0x7ff   :  { %v2062_v17 = vpop.f32.mrb[67].mxu0 }
 0x800   :  { %v2122_v19 = vmax.f32 %v2060_v15, 0.0  ;;  %v2063_v21 = vadd.f32 %v2697_v9, %v2062_v17 }
 0x802   :  { %v2146_v22 = vsub.f32 %v2122_v19, %v2706_v16  ;;  %v2123_v23 = vmax.f32 %v2063_v21, 0.0 }
 0x804   :  { %v2168_v25 = vmul.f32 %v2166_v20, %v2146_v22  ;;  %v2147_v12 = vsub.f32 %v2123_v23, %v2706_v16  ;;  %v3127_v37 = vpop.f32.mrb[68].mxu0 }
 0x805   :  { %v2075_v38 = vpop.f32.mrb[69].mxu0 }
 0x806   :  { %v2190_v27 = vmul.f32 %v2707_v24, %v2168_v25  ;;  %v2169_v28 = vmul.f32 %v2166_v20, %v2147_v12  ;;  %v3128_v40 = vpop.f32.mrb[70].mxu0 }
 0x807   :  { %v2078_v41 = vpop.f32.mrb[71].mxu0 }
 0x808   :  { %v2212_v29 = vadd.f32 %v2708_v14, %v2190_v27  ;;  %v2191_v31 = vmul.f32 %v2707_v24, %v2169_v28 }
 0x80a   :  { %v2213_v32 = vadd.f32 %v2708_v14, %v2191_v31 }
 0x80c   :  { %v2276_v33 = vpack.c.bf16 %v2213_v32, %v2212_v29  ;;  %v3131_v43 = vpop.f32.mrb[72].mxu0 }
 0x80d   :  { %v2091_v44 = vpop.f32.mrb[73].mxu0 }
 0x80e   :  { %3138 = vmatpush3.bf16.msra.mxu1 %v2276_v33  ;;  %v3132_v47 = vpop.f32.mrb[74].mxu0 }
 0x80f   :  { %3163 = vmatprep.subr.bf16.mxu1 %v3301_v18  ;;  %v2094_v45 = vpop.f32.mrb[75].mxu0 }
 0x811   :  { %3140 = vmatmul.mubr.bf16.vlgmr.msra.gmra.mrb[64].mxu1 %v2284_v30 }
 0x812   :  { %3179 = vmatprep.mubr.msk.bf16.mxu1 %vm3302_vm0, %v3301_v18  ;;  %3164 = vmatpush3.bf16.msra.mxu1 %v3275_v35 }
 0x813   :  { %3165 = vmatprep.subr.bf16.mxu1 %v3301_v18 }
 0x814   :  { %v3135_v49 = vpop.f32.mrb[76].mxu0 }
 0x815   :  { %v2107_v50 = vpop.f32.mrb[77].mxu0 }
 0x816   :  { %3166 = vmatpush3.bf16.msra.mxu1 %v3276_v36  ;;  %v3136_v51 = vpop.f32.mrb[78].mxu0 }
 0x817   :  { %3167 = vmatprep.subr.bf16.mxu1 %v3301_v18  ;;  %v2110_v52 = vpop.f32.mrb[79].mxu0 }
 0x81a   :  { %3168 = vmatpush3.bf16.msra.mxu1 %v3277_v39 }
 0x81b   :  { %3169 = vmatprep.subr.bf16.mxu1 %v3301_v18 }
 0x81e   :  { %3170 = vmatpush3.bf16.msra.mxu1 %v3278_v42 }
 0x81f   :  { %3171 = vmatprep.subr.bf16.mxu1 %v3301_v18 }
 0x822   :  { %3172 = vmatpush3.bf16.msra.mxu1 %v3279_v46 }
 0x823   :  { %3173 = vmatprep.subr.bf16.mxu1 %v3301_v18 }
 0x826   :  { %3174 = vmatpush3.bf16.msra.mxu1 %v3280_v48 }
 0x827   :  { %3175 = vmatprep.subr.bf16.mxu1 %v3301_v18 }
 0x82a   :  { %3176 = vmatpush3.bf16.msra.mxu1 %v3281_v60 }
 0x82b   :  { %3177 = vmatprep.subr.bf16.mxu1 %v3301_v18  ;;  %v2718_v18 = vld [vmem:[%s3941_s23] ss:$0 sm:$0xff] }
 0x82e   :  { %3178 = vmatpush3.bf16.msra.mxu1 %v3282_v61 }
 0x8e4   :  { %v2319_v54 = vpop.f32.mrb[64].mxu1 }
 0x8e5   :  { %v2331_v55 = vmul.f32 %v2329_v53, %v2319_v54  ;;  %v3141_v56 = vpop.f32.mrb[65].mxu1 }
 0x8e6   :  { %v2322_v57 = vpop.f32.mrb[66].mxu1 }
 0x8e7   :  { %v2332_v58 = vpack.c.bf16 %v2331_v55, %v2331_v55  ;;  %v3142_v59 = vpop.f32.mrb[67].mxu1 }
 0x8e9   :  { %3160 = vmatmul.mubr.bf16.vlgmr.msra.gmra.mrb[80].mxu0 %v2332_v58 }
 0x9bc   :  { %v2438_v63 = vpop.f32.mrb[80].mxu0 }
 0x9bd   :  { %v2439_v0 = vadd.f32 %v2709_v62, %v2438_v63  ;;  %v3161_v2 = vpop.f32.mrb[81].mxu0 }
 0x9be   :  { %v2441_v3 = vpop.f32.mrb[82].mxu0 }
 0x9bf   :  { %v2444_v4 = vmax.f32 %v2439_v0, 0.0  ;;  %v3162_v1 = vpop.f32.mrb[83].mxu0 }
 0x9c1   :  { %v2445_v5 = vpack.c.bf16 %v2444_v4, %v2444_v4 }
 0x9c3   :  { %3180 = vmatmul.mubr.bf16.vlgmr.msra.gmra.mrb[68].mxu1 %v2445_v5 }
 0xa96   :  { %v2551_v7 = vpop.f32.mrb[68].mxu1 }
 0xa97   :  { %v2552_v9 = vadd.f32 %v2718_v18, %v2551_v7  ;;  %v3181_v11 = vpop.f32.mrb[69].mxu1 }
 0xa98   :  { %v2554_v10 = vpop.f32.mrb[70].mxu1 }
 0xa99   :  { %v2560_v13 = vsel %vm2559_vm1, %v2552_v9, -1e+30  ;;  %v3182_v15 = vpop.f32.mrb[71].mxu1 }
 0xa9a   :  { %2561 = vmax.xlane.f32.xlu0 %v2560_v13 }
 0xb27   :  { %v2562_v8 = vpop.xlane.xlu0 %2561 }
 0xb28   :  { %v2563_v16 = vsub.f32 %v2560_v13, %v2562_v8 }
 0xb2a   :  { %v2564_v17 = vmul.f32 1.442695, %v2563_v16 }
 0xb2c   :  { %3297 = vpow2.f32 %v2564_v17 }
 0xb36   :  { %v3298_v19 = vpop.eup %3297 }
 0xb37   :  { %2566 = vadd.xlane.f32.xlu1 %v3298_v19 }
 0xbc4   :  { %v2567_v20 = vpop.xlane.xlu1 %2566 }
 0xbc5   :  { %3299 = vlog2.f32 %v2567_v20 }
 0xbcf   :  { %v3300_v26 = vpop.eup %3299 }
 0xbd0   :  { %v2569_v21 = vmul.f32 0.6931472, %v3300_v26 }
 0xbd2   :  { %v2570_v22 = vsub.f32 %v2563_v16, %v2569_v21 }
 0xbd4   :  { %2571 = vst [vmem:[%s3942_s24] sm:$0xff] %v2570_v22 }

</bundles_post_ra>
